<compile_context>
chip_gen: v7x
topology: tpu7x:2x2x1
jax: 0.10.0
libtpu: 0.0.40
codegen_flags: <defaults>
</compile_context>

<pallas_src>
import functools

import jax
import jax.numpy as jnp
from jax.experimental import pallas as pl
from jax.experimental.pallas import tpu as pltpu

LANE = 128                       # lane width: matmul N padded to a multiple
TILE_M = 512                     # matmul rows per grid step (production sizes)
# NOTE: v5e MXU is 4x128^2 (128-wide native tile); v6e/v7x are 2x256^2.  N is
# kept whole here because Cout <= 256 at these model sizes.
VMEM_LIMIT = 48 * 1024 * 1024    # sized against v7x's 64 MiB physical VMEM


def _round_up(x, m):
    return (x + m - 1) // m * m


# ----------------------------------------------------------------------------
# Fused matmul kernel:  out = lrelu( (A @ W) * scale + shift )
#   scale/shift carry conv bias + folded eval-mode BatchNorm.
# ----------------------------------------------------------------------------
def _fused_matmul_kernel(a_ref, w_ref, scale_ref, shift_ref, o_ref, *, apply_lrelu):
    acc = jnp.dot(a_ref[...], w_ref[...], preferred_element_type=jnp.float32)
    acc = acc * scale_ref[...] + shift_ref[...]
    if apply_lrelu:
        acc = jnp.where(acc >= 0, acc, 0.2 * acc)
    o_ref[...] = acc.astype(o_ref.dtype)


def fused_matmul(a, w, scale, shift, *, apply_lrelu, out_dtype=jnp.bfloat16):
    """a: (M, K); w: (K, Np) bf16 with Np % 128 == 0; scale/shift: (1, Np) f32.

    Returns (M, Np) in out_dtype (caller slices padded N columns off)."""
    M, K = a.shape
    Np = w.shape[1]
    if M <= TILE_M:
        Mp = _round_up(M, 8)
        tm = Mp
    else:
        Mp = _round_up(M, TILE_M)
        tm = TILE_M
    a_p = a.astype(jnp.bfloat16)
    if Mp != M:
        a_p = jnp.pad(a_p, ((0, Mp - M), (0, 0)))
    out = pl.pallas_call(
        functools.partial(_fused_matmul_kernel, apply_lrelu=apply_lrelu),
        out_shape=jax.ShapeDtypeStruct((Mp, Np), out_dtype),
        grid_spec=pltpu.PrefetchScalarGridSpec(
            num_scalar_prefetch=0,
            grid=(Mp // tm,),
            in_specs=[
                pl.BlockSpec((tm, K), lambda i: (i, 0)),
                pl.BlockSpec((K, Np), lambda i: (0, 0)),
                pl.BlockSpec((1, Np), lambda i: (0, 0)),
                pl.BlockSpec((1, Np), lambda i: (0, 0)),
            ],
            out_specs=pl.BlockSpec((tm, Np), lambda i: (i, 0)),
        ),
        compiler_params=pltpu.CompilerParams(
            dimension_semantics=("parallel",),
            vmem_limit_bytes=VMEM_LIMIT,
        ),
    )(a_p, w, scale, shift)
    if Mp != M:
        out = out[:M]
    return out


# ----------------------------------------------------------------------------
# Self-attention kernel (SAGAN style) on channels-last flattened activations.
# ----------------------------------------------------------------------------
def _self_attention_kernel(x_ref, wq_ref, wk_ref, wv_ref, bq_ref, bk_ref, bv_ref,
                           gamma_ref, o_ref, *, batch, hw):
    xb = x_ref[...]                                  # (B*HW, C) bf16
    x = xb.astype(jnp.float32)
    # 1x1 convs as ONE 2-D matmul each on the flattened (B*HW, C) layout.
    q = jnp.dot(xb, wq_ref[...], preferred_element_type=jnp.float32) + bq_ref[...]
    k = jnp.dot(xb, wk_ref[...], preferred_element_type=jnp.float32) + bk_ref[...]
    v = jnp.dot(xb, wv_ref[...], preferred_element_type=jnp.float32) + bv_ref[...]
    cq = q.shape[-1]
    c = v.shape[-1]
    qb = q.reshape(batch, hw, cq)
    kb = k.reshape(batch, hw, cq)
    vb = v.reshape(batch, hw, c)
    # energy[b,n,m] = <q[b,n,:], k[b,m,:]>   (== Q^T K of the NCHW formulation)
    energy = jnp.einsum('bnc,bmc->bnm', qb, kb, preferred_element_type=jnp.float32)
    m = jnp.max(energy, axis=-1, keepdims=True)
    e = jnp.exp(energy - m)
    attn = e * pl.reciprocal(jnp.sum(e, axis=-1, keepdims=True), approx=True)
    # out[b,n,c] = sum_m attn[b,n,m] * v[b,m,c]   (== V attn^T, channels-last)
    out = jnp.einsum('bnm,bmc->bnc', attn, vb, preferred_element_type=jnp.float32)
    gamma = gamma_ref[0]
    o_ref[...] = (gamma * out.reshape(batch * hw, c) + x).astype(o_ref.dtype)


def self_attention(x_nhwc, p):
    B, H, W, C = x_nhwc.shape
    hw = H * W
    xf = x_nhwc.reshape(B * hw, C).astype(jnp.bfloat16)
    vmem = pl.BlockSpec(memory_space=pltpu.MemorySpace.VMEM)
    smem = pl.BlockSpec(memory_space=pltpu.MemorySpace.SMEM)
    out = pl.pallas_call(
        functools.partial(_self_attention_kernel, batch=B, hw=hw),
        out_shape=jax.ShapeDtypeStruct((B * hw, C), jnp.bfloat16),
        in_specs=[vmem, vmem, vmem, vmem, vmem, vmem, vmem, smem],
        out_specs=vmem,
        compiler_params=pltpu.CompilerParams(vmem_limit_bytes=VMEM_LIMIT),
    )(xf, p['attn_wq'], p['attn_wk'], p['attn_wv'],
      p['attn_bq'], p['attn_bk'], p['attn_bv'], p['attn_gamma'])
    return out.reshape(B, H, W, C)


# ----------------------------------------------------------------------------
# Fused classifier tail:  fc1 -> lrelu -> fc2 -> lrelu -> fc3 in one kernel.
# All weights pre-padded to lane multiples; intermediates stay in VMEM/vregs.
# ----------------------------------------------------------------------------
def _classifier_kernel(x_ref, w1_ref, b1_ref, w2_ref, b2_ref, w3_ref, b3_ref, o_ref):
    h = jnp.dot(x_ref[...], w1_ref[...], preferred_element_type=jnp.float32) + b1_ref[...]
    h = jnp.where(h >= 0, h, 0.2 * h)
    h = jnp.dot(h.astype(jnp.bfloat16), w2_ref[...],
                preferred_element_type=jnp.float32) + b2_ref[...]
    h = jnp.where(h >= 0, h, 0.2 * h)
    h = jnp.dot(h.astype(jnp.bfloat16), w3_ref[...],
                preferred_element_type=jnp.float32) + b3_ref[...]
    o_ref[...] = h.astype(o_ref.dtype)


def classifier(x, p):
    B = x.shape[0]
    Bp = _round_up(B, 8)
    xp = x.astype(jnp.bfloat16)
    if Bp != B:
        xp = jnp.pad(xp, ((0, Bp - B), (0, 0)))
    n3p = p['fc3_w'].shape[1]
    out = pl.pallas_call(
        _classifier_kernel,
        out_shape=jax.ShapeDtypeStruct((Bp, n3p), jnp.float32),
        compiler_params=pltpu.CompilerParams(vmem_limit_bytes=VMEM_LIMIT),
    )(xp, p['fc1_w'], p['fc1_b'], p['fc2_w'], p['fc2_b'], p['fc3_w'], p['fc3_b'])
    return out[:B, :1]


# ----------------------------------------------------------------------------
# Conv glue: NHWC im2col (transpose-free) feeding the fused matmul kernel.
# ----------------------------------------------------------------------------
def _im2col_nhwc(x, k, stride, pad):
    # TODO(synk): gather the k*k patches inside the Pallas kernel via manual
    # DMA so the expanded cols tensor never materializes in HBM.
    N, H, W, C = x.shape
    if pad:
        x = jnp.pad(x, ((0, 0), (pad, pad), (pad, pad), (0, 0)))
    Ho = (H + 2 * pad - k) // stride + 1
    Wo = (W + 2 * pad - k) // stride + 1
    patches = []
    for i in range(k):
        for j in range(k):
            patches.append(x[:, i:i + stride * Ho:stride, j:j + stride * Wo:stride, :])
    cols = jnp.stack(patches, axis=3)                  # (N, Ho, Wo, k*k, C)
    return cols.reshape(N * Ho * Wo, k * k * C), Ho, Wo


def conv_block(x_nhwc, layer, cfg):
    """Conv2d (+ folded eval-mode BatchNorm2d) + LeakyReLU(0.2), NHWC layout."""
    cout, k, stride, pad = cfg
    N = x_nhwc.shape[0]
    cols, Ho, Wo = _im2col_nhwc(x_nhwc, k, stride, pad)
    out = fused_matmul(cols, layer['w'], layer['scale'], layer['shift'],
                       apply_lrelu=True)
    return out[:, :cout].reshape(N, Ho, Wo, cout)


# ----------------------------------------------------------------------------
# Parameter construction (deterministic, synthetic, PyTorch layouts)
# ----------------------------------------------------------------------------
def init_params(key, img_size=16, num_classes=10, num_hiddens=32, in_channels=3):
    ks = iter(jax.random.split(key, 40))
    nrm = lambda shape, s=0.05: (s * jax.random.normal(next(ks), shape)
                                 ).astype(jnp.float32)
    pos = lambda shape: (0.5 + jax.random.uniform(next(ks), shape)
                         ).astype(jnp.float32)
    nh = num_hiddens
    C_attn = nh * 2
    ds = img_size // 8
    flat_dim = nh * 8 * ds * ds + num_classes * 2
    p = {
        'emb':   nrm((num_classes, num_classes * 2), 0.5),
        'conv1_w': nrm((nh, in_channels, 4, 4)),      'conv1_b': nrm((nh,)),
        'conv2_w': nrm((nh * 2, nh, 4, 4)),           'conv2_b': nrm((nh * 2,)),
        'bn2': (pos((nh * 2,)), nrm((nh * 2,)), nrm((nh * 2,)), pos((nh * 2,))),
        'attn_wq': nrm((C_attn // 8, C_attn)),        'attn_bq': nrm((C_attn // 8,)),
        'attn_wk': nrm((C_attn // 8, C_attn)),        'attn_bk': nrm((C_attn // 8,)),
        'attn_wv': nrm((C_attn, C_attn)),             'attn_bv': nrm((C_attn,)),
        'attn_gamma': jnp.array([0.3], jnp.float32),
        'conv3_w': nrm((nh * 4, nh * 2, 4, 4)),       'conv3_b': nrm((nh * 4,)),
        'bn3': (pos((nh * 4,)), nrm((nh * 4,)), nrm((nh * 4,)), pos((nh * 4,))),
        'conv4_w': nrm((nh * 8, nh * 4, 3, 3)),       'conv4_b': nrm((nh * 8,)),
        'bn4': (pos((nh * 8,)), nrm((nh * 8,)), nrm((nh * 8,)), pos((nh * 8,))),
        'fc1_w': nrm((nh * 4, flat_dim)),             'fc1_b': nrm((nh * 4,)),
        'fc2_w': nrm((nh * 2, nh * 4)),               'fc2_b': nrm((nh * 2,)),
        'fc3_w': nrm((1, nh * 2)),                    'fc3_b': nrm((1,)),
    }
    return p


def preprocess_params(raw):
    """One-time (outside jit): reshape weights to matmul layout, fold BN into
    scale/shift, cast to bf16 and pad N to lane (128) multiples."""
    eps = 1e-5
    proc, meta = {}, {}

    conv_cfg = [('conv1', None, 2, 1), ('conv2', 'bn2', 2, 1),
                ('conv3', 'bn3', 2, 1), ('conv4', 'bn4', 1, 1)]
    for name, bn_name, stride, pad in conv_cfg:
        w = raw[name + '_w']
        b = raw[name + '_b'].astype(jnp.float32)
        cout, cin, kh, kw = w.shape
        if bn_name is None:
            scale = jnp.ones((cout,), jnp.float32)
            shift = b
        else:
            g, beta, mean, var = raw[bn_name]
            s = (g / jnp.sqrt(var + eps)).astype(jnp.float32)
            scale = s
            shift = b * s + beta.astype(jnp.float32) - mean * s
        # NHWC im2col ordering is (ki, kj, cin) -> weight rows must match.
        wmat = w.transpose(2, 3, 1, 0).reshape(kh * kw * cin, cout)
        npad = _round_up(cout, LANE)
        proc[name] = {
            'w': jnp.pad(wmat, ((0, 0), (0, npad - cout))).astype(jnp.bfloat16),
            'scale': jnp.pad(scale, (0, npad - cout)).reshape(1, npad),
            'shift': jnp.pad(shift, (0, npad - cout)).reshape(1, npad),
        }
        meta[name] = (cout, kh, stride, pad)

    # self-attention 1x1 convs: store as (C, Cout) for x @ W on the MXU.
    proc['attn_wq'] = raw['attn_wq'].T.astype(jnp.bfloat16)
    proc['attn_wk'] = raw['attn_wk'].T.astype(jnp.bfloat16)
    proc['attn_wv'] = raw['attn_wv'].T.astype(jnp.bfloat16)
    proc['attn_bq'] = raw['attn_bq'].reshape(1, -1).astype(jnp.float32)
    proc['attn_bk'] = raw['attn_bk'].reshape(1, -1).astype(jnp.float32)
    proc['attn_bv'] = raw['attn_bv'].reshape(1, -1).astype(jnp.float32)
    proc['attn_gamma'] = raw['attn_gamma'].reshape(1).astype(jnp.float32)

    # classifier: torch Linear (N, K) -> (Kp, Np), K padded to the previous
    # layer's padded N (zero rows), N padded to a lane multiple (zero cols).
    def fc(name, k_target=None):
        w = raw[name + '_w'].T                         # (K, N)
        b = raw[name + '_b'].astype(jnp.float32)
        K, N = w.shape
        kp = k_target if k_target is not None else K
        npad = _round_up(N, LANE)
        wp = jnp.pad(w, ((0, kp - K), (0, npad - N))).astype(jnp.bfloat16)
        bp = jnp.pad(b, (0, npad - N)).reshape(1, npad)
        return wp, bp

    w1, b1 = fc('fc1')
    w2, b2 = fc('fc2', k_target=w1.shape[1])
    w3, b3 = fc('fc3', k_target=w2.shape[1])
    proc.update(fc1_w=w1, fc1_b=b1, fc2_w=w2, fc2_b=b2, fc3_w=w3, fc3_b=b3)

    proc['emb'] = raw['emb'].astype(jnp.float32)
    return proc, meta


# ----------------------------------------------------------------------------
# Discriminator forward (jitted as a single program)
# ----------------------------------------------------------------------------
def _forward_impl(params, image, labels, meta):
    # PyTorch NCHW input -> NHWC once; stay NHWC through the conv stack.
    x = jnp.transpose(image, (0, 2, 3, 1)).astype(jnp.bfloat16)
    x = conv_block(x, params['conv1'], meta['conv1'])        # Dropout2d = id
    x = conv_block(x, params['conv2'], meta['conv2'])
    x = self_attention(x, params)
    x = conv_block(x, params['conv3'], meta['conv3'])
    x = conv_block(x, params['conv4'], meta['conv4'])
    # Flatten in torch's NCHW .view ordering (single small transpose).
    B = x.shape[0]
    x = jnp.transpose(x, (0, 3, 1, 2)).reshape(B, -1)
    emb = params['emb'][labels].astype(jnp.bfloat16)
    x = jnp.concatenate([x, emb], axis=1)
    return classifier(x, params)                             # Dropout = id


def make_forward(meta):
    @jax.jit
    def fwd(params, image, labels):
        return _forward_impl(params, image, labels, meta)
    return fwd


if __name__ == "__main__":
    key = jax.random.PRNGKey(0)
    k_param, k_img, k_lab = jax.random.split(key, 3)

    # Small shapes consistent with the module: img_size=16, num_hiddens=32.
    B, C_IN, IMG, NH, NCLS = 2, 3, 16, 32, 10
    raw = init_params(k_param, img_size=IMG, num_classes=NCLS,
                      num_hiddens=NH, in_channels=C_IN)
    params, meta = preprocess_params(raw)
    forward = make_forward(meta)

    image = jax.random.normal(k_img, (B, C_IN, IMG, IMG), jnp.float32)
    labels = jax.random.randint(k_lab, (B,), 0, NCLS)

    out = jax.block_until_ready(forward(params, image, labels))
    assert out.shape == (B, 1), out.shape
    assert bool(jnp.all(jnp.isfinite(out)))
    print("KERNEL_OK")
</pallas_src>

<mosaic_0001>
module attributes {stable_mosaic.version = 11 : i64} {
  func.func @_fused_matmul_kernel(%arg0: i32, %arg1: memref<128x48xbf16, #tpu.memory_space<vmem>>, %arg2: memref<48x128xbf16, #tpu.memory_space<vmem>>, %arg3: memref<1x128xf32, #tpu.memory_space<vmem>>, %arg4: memref<1x128xf32, #tpu.memory_space<vmem>>, %arg5: memref<128x128xbf16, #tpu.memory_space<vmem>>) attributes {dimension_semantics = [#tpu.dimension_semantics<parallel>], iteration_bounds = array<i64: 1>, scalar_prefetch = 0 : i64, scratch_operands = 0 : i64, tpu.core_type = #tpu.core_type<tc>, window_params = [{transform_indices = @transform_0, window_bounds = array<i64: 128, 48>}, {pipeline_mode = #tpu.pipeline_mode<synchronous>, transform_indices = @transform_1, window_bounds = array<i64: 48, 128>}, {pipeline_mode = #tpu.pipeline_mode<synchronous>, transform_indices = @transform_2, window_bounds = array<i64: 1, 128>}, {pipeline_mode = #tpu.pipeline_mode<synchronous>, transform_indices = @transform_3, window_bounds = array<i64: 1, 128>}, {transform_indices = @transform_4, window_bounds = array<i64: 128, 128>}]} {
    %c0 = arith.constant 0 : index
    %c0_0 = arith.constant 0 : index
    %0 = vector.load %arg1[%c0, %c0_0] : memref<128x48xbf16, #tpu.memory_space<vmem>>, vector<128x48xbf16>
    %c0_1 = arith.constant 0 : index
    %c0_2 = arith.constant 0 : index
    %1 = vector.load %arg2[%c0_1, %c0_2] : memref<48x128xbf16, #tpu.memory_space<vmem>>, vector<48x128xbf16>
    %cst = arith.constant dense<0.000000e+00> : vector<128x128xf32>
    %2 = tpu.matmul %0, %1, %cst {dimension_numbers = #tpu.dot_dimension_numbers<[1], [0], [0], [1], [0, 0, 1, 1], [], []>} : vector<128x48xbf16>, vector<48x128xbf16>, vector<128x128xf32> -> vector<128x128xf32>
    %c0_3 = arith.constant 0 : index
    %c0_4 = arith.constant 0 : index
    %3 = vector.load %arg3[%c0_3, %c0_4] : memref<1x128xf32, #tpu.memory_space<vmem>>, vector<1x128xf32>
    %4 = vector.broadcast %3 : vector<1x128xf32> to vector<128x128xf32>
    %5 = arith.mulf %2, %4 : vector<128x128xf32>
    %c0_5 = arith.constant 0 : index
    %c0_6 = arith.constant 0 : index
    %6 = vector.load %arg4[%c0_5, %c0_6] : memref<1x128xf32, #tpu.memory_space<vmem>>, vector<1x128xf32>
    %7 = vector.broadcast %6 : vector<1x128xf32> to vector<128x128xf32>
    %8 = arith.addf %5, %7 : vector<128x128xf32>
    %cst_7 = arith.constant 0.000000e+00 : f32
    %9 = vector.broadcast %cst_7 : f32 to vector<128x128xf32>
    %10 = arith.cmpf oge, %8, %9 : vector<128x128xf32>
    %cst_8 = arith.constant 2.000000e-01 : f32
    %11 = vector.broadcast %cst_8 : f32 to vector<128x128xf32>
    %12 = arith.mulf %11, %8 : vector<128x128xf32>
    %13 = arith.select %10, %8, %12 : vector<128x128xi1>, vector<128x128xf32>
    %14 = arith.truncf %13 : vector<128x128xf32> to vector<128x128xbf16>
    %c0_9 = arith.constant 0 : index
    %c0_10 = arith.constant 0 : index
    %15 = vector.load %arg5[%c0_9, %c0_10] : memref<128x128xbf16, #tpu.memory_space<vmem>>, vector<128x128xbf16>
    tpu.vector_store %arg5[%c0_9, %c0_10], %14 {strides = array<i32>} : memref<128x128xbf16, #tpu.memory_space<vmem>>, vector<128x128xbf16>,
    return
  }
  func.func @transform_0(%arg0: i32) -> (i32, i32) {
    %c0_i32 = arith.constant 0 : i32
    %c0_i32_0 = arith.constant 0 : i32
    return %arg0, %c0_i32 : i32, i32
  }
  func.func @transform_1(%arg0: i32) -> (i32, i32) {
    %c0_i32 = arith.constant 0 : i32
    %c0_i32_0 = arith.constant 0 : i32
    %c0_i32_1 = arith.constant 0 : i32
    return %c0_i32, %c0_i32_0 : i32, i32
  }
  func.func @transform_2(%arg0: i32) -> (i32, i32) {
    %c0_i32 = arith.constant 0 : i32
    %c0_i32_0 = arith.constant 0 : i32
    %c0_i32_1 = arith.constant 0 : i32
    return %c0_i32, %c0_i32_0 : i32, i32
  }
  func.func @transform_3(%arg0: i32) -> (i32, i32) {
    %c0_i32 = arith.constant 0 : i32
    %c0_i32_0 = arith.constant 0 : i32
    %c0_i32_1 = arith.constant 0 : i32
    return %c0_i32, %c0_i32_0 : i32, i32
  }
  func.func @transform_4(%arg0: i32) -> (i32, i32) {
    %c0_i32 = arith.constant 0 : i32
    %c0_i32_0 = arith.constant 0 : i32
    return %arg0, %c0_i32 : i32, i32
  }
}

module attributes {stable_mosaic.version = 11 : i64} {
  func.func @_fused_matmul_kernel(%arg0: i32, %arg1: memref<32x512xbf16, #tpu.memory_space<vmem>>, %arg2: memref<512x128xbf16, #tpu.memory_space<vmem>>, %arg3: memref<1x128xf32, #tpu.memory_space<vmem>>, %arg4: memref<1x128xf32, #tpu.memory_space<vmem>>, %arg5: memref<32x128xbf16, #tpu.memory_space<vmem>>) attributes {dimension_semantics = [#tpu.dimension_semantics<parallel>], iteration_bounds = array<i64: 1>, scalar_prefetch = 0 : i64, scratch_operands = 0 : i64, tpu.core_type = #tpu.core_type<tc>, window_params = [{transform_indices = @transform_0, window_bounds = array<i64: 32, 512>}, {pipeline_mode = #tpu.pipeline_mode<synchronous>, transform_indices = @transform_1, window_bounds = array<i64: 512, 128>}, {pipeline_mode = #tpu.pipeline_mode<synchronous>, transform_indices = @transform_2, window_bounds = array<i64: 1, 128>}, {pipeline_mode = #tpu.pipeline_mode<synchronous>, transform_indices = @transform_3, window_bounds = array<i64: 1, 128>}, {transform_indices = @transform_4, window_bounds = array<i64: 32, 128>}]} {
    %c0 = arith.constant 0 : index
    %c0_0 = arith.constant 0 : index
    %0 = vector.load %arg1[%c0, %c0_0] : memref<32x512xbf16, #tpu.memory_space<vmem>>, vector<32x512xbf16>
    %c0_1 = arith.constant 0 : index
    %c0_2 = arith.constant 0 : index
    %1 = vector.load %arg2[%c0_1, %c0_2] : memref<512x128xbf16, #tpu.memory_space<vmem>>, vector<512x128xbf16>
    %cst = arith.constant dense<0.000000e+00> : vector<32x128xf32>
    %2 = tpu.matmul %0, %1, %cst {dimension_numbers = #tpu.dot_dimension_numbers<[1], [0], [0], [1], [0, 0, 1, 1], [], []>} : vector<32x512xbf16>, vector<512x128xbf16>, vector<32x128xf32> -> vector<32x128xf32>
    %c0_3 = arith.constant 0 : index
    %c0_4 = arith.constant 0 : index
    %3 = vector.load %arg3[%c0_3, %c0_4] : memref<1x128xf32, #tpu.memory_space<vmem>>, vector<1x128xf32>
    %4 = vector.broadcast %3 : vector<1x128xf32> to vector<32x128xf32>
    %5 = arith.mulf %2, %4 : vector<32x128xf32>
    %c0_5 = arith.constant 0 : index
    %c0_6 = arith.constant 0 : index
    %6 = vector.load %arg4[%c0_5, %c0_6] : memref<1x128xf32, #tpu.memory_space<vmem>>, vector<1x128xf32>
    %7 = vector.broadcast %6 : vector<1x128xf32> to vector<32x128xf32>
    %8 = arith.addf %5, %7 : vector<32x128xf32>
    %cst_7 = arith.constant 0.000000e+00 : f32
    %9 = vector.broadcast %cst_7 : f32 to vector<32x128xf32>
    %10 = arith.cmpf oge, %8, %9 : vector<32x128xf32>
    %cst_8 = arith.constant 2.000000e-01 : f32
    %11 = vector.broadcast %cst_8 : f32 to vector<32x128xf32>
    %12 = arith.mulf %11, %8 : vector<32x128xf32>
    %13 = arith.select %10, %8, %12 : vector<32x128xi1>, vector<32x128xf32>
    %14 = arith.truncf %13 : vector<32x128xf32> to vector<32x128xbf16>
    %c0_9 = arith.constant 0 : index
    %c0_10 = arith.constant 0 : index
    %15 = vector.load %arg5[%c0_9, %c0_10] : memref<32x128xbf16, #tpu.memory_space<vmem>>, vector<32x128xbf16>
    tpu.vector_store %arg5[%c0_9, %c0_10], %14 {strides = array<i32>} : memref<32x128xbf16, #tpu.memory_space<vmem>>, vector<32x128xbf16>,
    return
  }
  func.func @transform_0(%arg0: i32) -> (i32, i32) {
    %c0_i32 = arith.constant 0 : i32
    %c0_i32_0 = arith.constant 0 : i32
    return %arg0, %c0_i32 : i32, i32
  }
  func.func @transform_1(%arg0: i32) -> (i32, i32) {
    %c0_i32 = arith.constant 0 : i32
    %c0_i32_0 = arith.constant 0 : i32
    %c0_i32_1 = arith.constant 0 : i32
    return %c0_i32, %c0_i32_0 : i32, i32
  }
  func.func @transform_2(%arg0: i32) -> (i32, i32) {
    %c0_i32 = arith.constant 0 : i32
    %c0_i32_0 = arith.constant 0 : i32
    %c0_i32_1 = arith.constant 0 : i32
    return %c0_i32, %c0_i32_0 : i32, i32
  }
  func.func @transform_3(%arg0: i32) -> (i32, i32) {
    %c0_i32 = arith.constant 0 : i32
    %c0_i32_0 = arith.constant 0 : i32
    %c0_i32_1 = arith.constant 0 : i32
    return %c0_i32, %c0_i32_0 : i32, i32
  }
  func.func @transform_4(%arg0: i32) -> (i32, i32) {
    %c0_i32 = arith.constant 0 : i32
    %c0_i32_0 = arith.constant 0 : i32
    return %arg0, %c0_i32 : i32, i32
  }
}

module attributes {stable_mosaic.version = 11 : i64} {
  func.func @_self_attention_kernel(%arg0: memref<32x64xbf16, #tpu.memory_space<vmem>>, %arg1: memref<64x8xbf16, #tpu.memory_space<vmem>>, %arg2: memref<64x8xbf16, #tpu.memory_space<vmem>>, %arg3: memref<64x64xbf16, #tpu.memory_space<vmem>>, %arg4: memref<1x8xf32, #tpu.memory_space<vmem>>, %arg5: memref<1x8xf32, #tpu.memory_space<vmem>>, %arg6: memref<1x64xf32, #tpu.memory_space<vmem>>, %arg7: memref<1xf32, #tpu.memory_space<smem>>, %arg8: memref<32x64xbf16, #tpu.memory_space<vmem>>) attributes {dimension_semantics = [], scalar_prefetch = 0 : i64, scratch_operands = 0 : i64, tpu.core_type = #tpu.core_type<tc>} {
    %c0 = arith.constant 0 : index
    %c0_0 = arith.constant 0 : index
    %0 = vector.load %arg0[%c0, %c0_0] : memref<32x64xbf16, #tpu.memory_space<vmem>>, vector<32x64xbf16>
    %1 = arith.extf %0 : vector<32x64xbf16> to vector<32x64xf32>
    %c0_1 = arith.constant 0 : index
    %c0_2 = arith.constant 0 : index
    %2 = vector.load %arg1[%c0_1, %c0_2] : memref<64x8xbf16, #tpu.memory_space<vmem>>, vector<64x8xbf16>
    %cst = arith.constant dense<0.000000e+00> : vector<32x8xf32>
    %3 = tpu.matmul %0, %2, %cst {dimension_numbers = #tpu.dot_dimension_numbers<[1], [0], [0], [1], [0, 0, 1, 1], [], []>} : vector<32x64xbf16>, vector<64x8xbf16>, vector<32x8xf32> -> vector<32x8xf32>
    %c0_3 = arith.constant 0 : index
    %c0_4 = arith.constant 0 : index
    %4 = vector.load %arg4[%c0_3, %c0_4] : memref<1x8xf32, #tpu.memory_space<vmem>>, vector<1x8xf32>
    %5 = vector.broadcast %4 : vector<1x8xf32> to vector<32x8xf32>
    %6 = arith.addf %3, %5 : vector<32x8xf32>
    %c0_5 = arith.constant 0 : index
    %c0_6 = arith.constant 0 : index
    %7 = vector.load %arg2[%c0_5, %c0_6] : memref<64x8xbf16, #tpu.memory_space<vmem>>, vector<64x8xbf16>
    %cst_7 = arith.constant dense<0.000000e+00> : vector<32x8xf32>
    %8 = tpu.matmul %0, %7, %cst_7 {dimension_numbers = #tpu.dot_dimension_numbers<[1], [0], [0], [1], [0, 0, 1, 1], [], []>} : vector<32x64xbf16>, vector<64x8xbf16>, vector<32x8xf32> -> vector<32x8xf32>
    %c0_8 = arith.constant 0 : index
    %c0_9 = arith.constant 0 : index
    %9 = vector.load %arg5[%c0_8, %c0_9] : memref<1x8xf32, #tpu.memory_space<vmem>>, vector<1x8xf32>
    %10 = vector.broadcast %9 : vector<1x8xf32> to vector<32x8xf32>
    %11 = arith.addf %8, %10 : vector<32x8xf32>
    %c0_10 = arith.constant 0 : index
    %c0_11 = arith.constant 0 : index
    %12 = vector.load %arg3[%c0_10, %c0_11] : memref<64x64xbf16, #tpu.memory_space<vmem>>, vector<64x64xbf16>
    %cst_12 = arith.constant dense<0.000000e+00> : vector<32x64xf32>
    %13 = tpu.matmul %0, %12, %cst_12 {dimension_numbers = #tpu.dot_dimension_numbers<[1], [0], [0], [1], [0, 0, 1, 1], [], []>} : vector<32x64xbf16>, vector<64x64xbf16>, vector<32x64xf32> -> vector<32x64xf32>
    %c0_13 = arith.constant 0 : index
    %c0_14 = arith.constant 0 : index
    %14 = vector.load %arg6[%c0_13, %c0_14] : memref<1x64xf32, #tpu.memory_space<vmem>>, vector<1x64xf32>
    %15 = vector.broadcast %14 : vector<1x64xf32> to vector<32x64xf32>
    %16 = arith.addf %13, %15 : vector<32x64xf32>
    %17 = vector.shape_cast %6 : vector<32x8xf32> to vector<2x16x8xf32>
    %18 = vector.shape_cast %11 : vector<32x8xf32> to vector<2x16x8xf32>
    %19 = vector.shape_cast %16 : vector<32x64xf32> to vector<2x16x64xf32>
    "tpu.trace_start"() <{level = 10 : i32, message = "bnc,bmc->bnm"}> : () -> ()
    %cst_15 = arith.constant dense<0.000000e+00> : vector<2x16x16xf32>
    %20 = tpu.matmul %17, %18, %cst_15 {dimension_numbers = #tpu.dot_dimension_numbers<[2], [2], [1], [1], [0, 0, 0, 1, 1, 1], [0], [0]>} : vector<2x16x8xf32>, vector<2x16x8xf32>, vector<2x16x16xf32> -> vector<2x16x16xf32>
    "tpu.trace_stop"() : () -> ()
    %cst_16 = arith.constant dense<0xFF800000> : vector<2x16xf32>
    %21 = vector.multi_reduction <maximumf>, %20, %cst_16 [2] : vector<2x16x16xf32> to vector<2x16xf32>
    %22 = vector.shape_cast %21 : vector<2x16xf32> to vector<2x16x1xf32>
    %23 = vector.broadcast %22 : vector<2x16x1xf32> to vector<2x16x16xf32>
    %24 = arith.subf %20, %23 : vector<2x16x16xf32>
    %25 = math.exp %24 : vector<2x16x16xf32>
    %cst_17 = arith.constant dense<0.000000e+00> : vector<2x16xf32>
    %26 = vector.multi_reduction <add>, %25, %cst_17 [2] : vector<2x16x16xf32> to vector<2x16xf32>
    %27 = vector.shape_cast %26 : vector<2x16xf32> to vector<2x16x1xf32>
    %28 = tpu.reciprocal %27 {approx = true} : vector<2x16x1xf32> -> vector<2x16x1xf32>
    %29 = vector.broadcast %28 : vector<2x16x1xf32> to vector<2x16x16xf32>
    %30 = arith.mulf %25, %29 : vector<2x16x16xf32>
    "tpu.trace_start"() <{level = 10 : i32, message = "bnm,bmc->bnc"}> : () -> ()
    %cst_18 = arith.constant dense<0.000000e+00> : vector<2x16x64xf32>
    %31 = tpu.matmul %30, %19, %cst_18 {dimension_numbers = #tpu.dot_dimension_numbers<[2], [1], [1], [2], [0, 0, 0, 1, 1, 2], [0], [0]>} : vector<2x16x16xf32>, vector<2x16x64xf32>, vector<2x16x64xf32> -> vector<2x16x64xf32>
    "tpu.trace_stop"() : () -> ()
    %c0_19 = arith.constant 0 : index
    %32 = memref.load %arg7[%c0_19] : memref<1xf32, #tpu.memory_space<smem>>
    %33 = vector.shape_cast %31 : vector<2x16x64xf32> to vector<32x64xf32>
    %34 = vector.broadcast %32 : f32 to vector<32x64xf32>
    %35 = arith.mulf %34, %33 : vector<32x64xf32>
    %36 = arith.addf %35, %1 : vector<32x64xf32>
    %37 = arith.truncf %36 : vector<32x64xf32> to vector<32x64xbf16>
    %c0_20 = arith.constant 0 : index
    %c0_21 = arith.constant 0 : index
    %38 = vector.load %arg8[%c0_20, %c0_21] : memref<32x64xbf16, #tpu.memory_space<vmem>>, vector<32x64xbf16>
    tpu.vector_store %arg8[%c0_20, %c0_21], %37 {strides = array<i32>} : memref<32x64xbf16, #tpu.memory_space<vmem>>, vector<32x64xbf16>,
    return
  }
}

module attributes {stable_mosaic.version = 11 : i64} {
  func.func @_fused_matmul_kernel(%arg0: i32, %arg1: memref<8x1024xbf16, #tpu.memory_space<vmem>>, %arg2: memref<1024x128xbf16, #tpu.memory_space<vmem>>, %arg3: memref<1x128xf32, #tpu.memory_space<vmem>>, %arg4: memref<1x128xf32, #tpu.memory_space<vmem>>, %arg5: memref<8x128xbf16, #tpu.memory_space<vmem>>) attributes {dimension_semantics = [#tpu.dimension_semantics<parallel>], iteration_bounds = array<i64: 1>, scalar_prefetch = 0 : i64, scratch_operands = 0 : i64, tpu.core_type = #tpu.core_type<tc>, window_params = [{transform_indices = @transform_0, window_bounds = array<i64: 8, 1024>}, {pipeline_mode = #tpu.pipeline_mode<synchronous>, transform_indices = @transform_1, window_bounds = array<i64: 1024, 128>}, {pipeline_mode = #tpu.pipeline_mode<synchronous>, transform_indices = @transform_2, window_bounds = array<i64: 1, 128>}, {pipeline_mode = #tpu.pipeline_mode<synchronous>, transform_indices = @transform_3, window_bounds = array<i64: 1, 128>}, {transform_indices = @transform_4, window_bounds = array<i64: 8, 128>}]} {
    %c0 = arith.constant 0 : index
    %c0_0 = arith.constant 0 : index
    %0 = vector.load %arg1[%c0, %c0_0] : memref<8x1024xbf16, #tpu.memory_space<vmem>>, vector<8x1024xbf16>
    %c0_1 = arith.constant 0 : index
    %c0_2 = arith.constant 0 : index
    %1 = vector.load %arg2[%c0_1, %c0_2] : memref<1024x128xbf16, #tpu.memory_space<vmem>>, vector<1024x128xbf16>
    %cst = arith.constant dense<0.000000e+00> : vector<8x128xf32>
    %2 = tpu.matmul %0, %1, %cst {dimension_numbers = #tpu.dot_dimension_numbers<[1], [0], [0], [1], [0, 0, 1, 1], [], []>} : vector<8x1024xbf16>, vector<1024x128xbf16>, vector<8x128xf32> -> vector<8x128xf32>
    %c0_3 = arith.constant 0 : index
    %c0_4 = arith.constant 0 : index
    %3 = vector.load %arg3[%c0_3, %c0_4] : memref<1x128xf32, #tpu.memory_space<vmem>>, vector<1x128xf32>
    %4 = vector.broadcast %3 : vector<1x128xf32> to vector<8x128xf32>
    %5 = arith.mulf %2, %4 : vector<8x128xf32>
    %c0_5 = arith.constant 0 : index
    %c0_6 = arith.constant 0 : index
    %6 = vector.load %arg4[%c0_5, %c0_6] : memref<1x128xf32, #tpu.memory_space<vmem>>, vector<1x128xf32>
    %7 = vector.broadcast %6 : vector<1x128xf32> to vector<8x128xf32>
    %8 = arith.addf %5, %7 : vector<8x128xf32>
    %cst_7 = arith.constant 0.000000e+00 : f32
    %9 = vector.broadcast %cst_7 : f32 to vector<8x128xf32>
    %10 = arith.cmpf oge, %8, %9 : vector<8x128xf32>
    %cst_8 = arith.constant 2.000000e-01 : f32
    %11 = vector.broadcast %cst_8 : f32 to vector<8x128xf32>
    %12 = arith.mulf %11, %8 : vector<8x128xf32>
    %13 = arith.select %10, %8, %12 : vector<8x128xi1>, vector<8x128xf32>
    %14 = arith.truncf %13 : vector<8x128xf32> to vector<8x128xbf16>
    %c0_9 = arith.constant 0 : index
    %c0_10 = arith.constant 0 : index
    %15 = vector.load %arg5[%c0_9, %c0_10] : memref<8x128xbf16, #tpu.memory_space<vmem>>, vector<8x128xbf16>
    tpu.vector_store %arg5[%c0_9, %c0_10], %14 {strides = array<i32>} : memref<8x128xbf16, #tpu.memory_space<vmem>>, vector<8x128xbf16>,
    return
  }
  func.func @transform_0(%arg0: i32) -> (i32, i32) {
    %c0_i32 = arith.constant 0 : i32
    %c0_i32_0 = arith.constant 0 : i32
    return %arg0, %c0_i32 : i32, i32
  }
  func.func @transform_1(%arg0: i32) -> (i32, i32) {
    %c0_i32 = arith.constant 0 : i32
    %c0_i32_0 = arith.constant 0 : i32
    %c0_i32_1 = arith.constant 0 : i32
    return %c0_i32, %c0_i32_0 : i32, i32
  }
  func.func @transform_2(%arg0: i32) -> (i32, i32) {
    %c0_i32 = arith.constant 0 : i32
    %c0_i32_0 = arith.constant 0 : i32
    %c0_i32_1 = arith.constant 0 : i32
    return %c0_i32, %c0_i32_0 : i32, i32
  }
  func.func @transform_3(%arg0: i32) -> (i32, i32) {
    %c0_i32 = arith.constant 0 : i32
    %c0_i32_0 = arith.constant 0 : i32
    %c0_i32_1 = arith.constant 0 : i32
    return %c0_i32, %c0_i32_0 : i32, i32
  }
  func.func @transform_4(%arg0: i32) -> (i32, i32) {
    %c0_i32 = arith.constant 0 : i32
    %c0_i32_0 = arith.constant 0 : i32
    return %arg0, %c0_i32 : i32, i32
  }
}

module attributes {stable_mosaic.version = 11 : i64} {
  func.func @_fused_matmul_kernel(%arg0: i32, %arg1: memref<8x1152xbf16, #tpu.memory_space<vmem>>, %arg2: memref<1152x256xbf16, #tpu.memory_space<vmem>>, %arg3: memref<1x256xf32, #tpu.memory_space<vmem>>, %arg4: memref<1x256xf32, #tpu.memory_space<vmem>>, %arg5: memref<8x256xbf16, #tpu.memory_space<vmem>>) attributes {dimension_semantics = [#tpu.dimension_semantics<parallel>], iteration_bounds = array<i64: 1>, scalar_prefetch = 0 : i64, scratch_operands = 0 : i64, tpu.core_type = #tpu.core_type<tc>, window_params = [{transform_indices = @transform_0, window_bounds = array<i64: 8, 1152>}, {pipeline_mode = #tpu.pipeline_mode<synchronous>, transform_indices = @transform_1, window_bounds = array<i64: 1152, 256>}, {pipeline_mode = #tpu.pipeline_mode<synchronous>, transform_indices = @transform_2, window_bounds = array<i64: 1, 256>}, {pipeline_mode = #tpu.pipeline_mode<synchronous>, transform_indices = @transform_3, window_bounds = array<i64: 1, 256>}, {transform_indices = @transform_4, window_bounds = array<i64: 8, 256>}]} {
    %c0 = arith.constant 0 : index
    %c0_0 = arith.constant 0 : index
    %0 = vector.load %arg1[%c0, %c0_0] : memref<8x1152xbf16, #tpu.memory_space<vmem>>, vector<8x1152xbf16>
    %c0_1 = arith.constant 0 : index
    %c0_2 = arith.constant 0 : index
    %1 = vector.load %arg2[%c0_1, %c0_2] : memref<1152x256xbf16, #tpu.memory_space<vmem>>, vector<1152x256xbf16>
    %cst = arith.constant dense<0.000000e+00> : vector<8x256xf32>
    %2 = tpu.matmul %0, %1, %cst {dimension_numbers = #tpu.dot_dimension_numbers<[1], [0], [0], [1], [0, 0, 1, 1], [], []>} : vector<8x1152xbf16>, vector<1152x256xbf16>, vector<8x256xf32> -> vector<8x256xf32>
    %c0_3 = arith.constant 0 : index
    %c0_4 = arith.constant 0 : index
    %3 = vector.load %arg3[%c0_3, %c0_4] : memref<1x256xf32, #tpu.memory_space<vmem>>, vector<1x256xf32>
    %4 = vector.broadcast %3 : vector<1x256xf32> to vector<8x256xf32>
    %5 = arith.mulf %2, %4 : vector<8x256xf32>
    %c0_5 = arith.constant 0 : index
    %c0_6 = arith.constant 0 : index
    %6 = vector.load %arg4[%c0_5, %c0_6] : memref<1x256xf32, #tpu.memory_space<vmem>>, vector<1x256xf32>
    %7 = vector.broadcast %6 : vector<1x256xf32> to vector<8x256xf32>
    %8 = arith.addf %5, %7 : vector<8x256xf32>
    %cst_7 = arith.constant 0.000000e+00 : f32
    %9 = vector.broadcast %cst_7 : f32 to vector<8x256xf32>
    %10 = arith.cmpf oge, %8, %9 : vector<8x256xf32>
    %cst_8 = arith.constant 2.000000e-01 : f32
    %11 = vector.broadcast %cst_8 : f32 to vector<8x256xf32>
    %12 = arith.mulf %11, %8 : vector<8x256xf32>
    %13 = arith.select %10, %8, %12 : vector<8x256xi1>, vector<8x256xf32>
    %14 = arith.truncf %13 : vector<8x256xf32> to vector<8x256xbf16>
    %c0_9 = arith.constant 0 : index
    %c0_10 = arith.constant 0 : index
    %15 = vector.load %arg5[%c0_9, %c0_10] : memref<8x256xbf16, #tpu.memory_space<vmem>>, vector<8x256xbf16>
    tpu.vector_store %arg5[%c0_9, %c0_10], %14 {strides = array<i32>} : memref<8x256xbf16, #tpu.memory_space<vmem>>, vector<8x256xbf16>,
    return
  }
  func.func @transform_0(%arg0: i32) -> (i32, i32) {
    %c0_i32 = arith.constant 0 : i32
    %c0_i32_0 = arith.constant 0 : i32
    return %arg0, %c0_i32 : i32, i32
  }
  func.func @transform_1(%arg0: i32) -> (i32, i32) {
    %c0_i32 = arith.constant 0 : i32
    %c0_i32_0 = arith.constant 0 : i32
    %c0_i32_1 = arith.constant 0 : i32
    return %c0_i32, %c0_i32_0 : i32, i32
  }
  func.func @transform_2(%arg0: i32) -> (i32, i32) {
    %c0_i32 = arith.constant 0 : i32
    %c0_i32_0 = arith.constant 0 : i32
    %c0_i32_1 = arith.constant 0 : i32
    return %c0_i32, %c0_i32_0 : i32, i32
  }
  func.func @transform_3(%arg0: i32) -> (i32, i32) {
    %c0_i32 = arith.constant 0 : i32
    %c0_i32_0 = arith.constant 0 : i32
    %c0_i32_1 = arith.constant 0 : i32
    return %c0_i32, %c0_i32_0 : i32, i32
  }
  func.func @transform_4(%arg0: i32) -> (i32, i32) {
    %c0_i32 = arith.constant 0 : i32
    %c0_i32_0 = arith.constant 0 : i32
    return %arg0, %c0_i32 : i32, i32
  }
}

module attributes {stable_mosaic.version = 11 : i64} {
  func.func @_classifier_kernel(%arg0: memref<8x1044xbf16, #tpu.memory_space<vmem>>, %arg1: memref<1044x128xbf16, #tpu.memory_space<vmem>>, %arg2: memref<1x128xf32, #tpu.memory_space<vmem>>, %arg3: memref<128x128xbf16, #tpu.memory_space<vmem>>, %arg4: memref<1x128xf32, #tpu.memory_space<vmem>>, %arg5: memref<128x128xbf16, #tpu.memory_space<vmem>>, %arg6: memref<1x128xf32, #tpu.memory_space<vmem>>, %arg7: memref<8x128xf32, #tpu.memory_space<vmem>>) attributes {dimension_semantics = [], scalar_prefetch = 0 : i64, scratch_operands = 0 : i64, tpu.core_type = #tpu.core_type<tc>} {
    %c0 = arith.constant 0 : index
    %c0_0 = arith.constant 0 : index
    %0 = vector.load %arg0[%c0, %c0_0] : memref<8x1044xbf16, #tpu.memory_space<vmem>>, vector<8x1044xbf16>
    %c0_1 = arith.constant 0 : index
    %c0_2 = arith.constant 0 : index
    %1 = vector.load %arg1[%c0_1, %c0_2] : memref<1044x128xbf16, #tpu.memory_space<vmem>>, vector<1044x128xbf16>
    %cst = arith.constant dense<0.000000e+00> : vector<8x128xf32>
    %2 = tpu.matmul %0, %1, %cst {dimension_numbers = #tpu.dot_dimension_numbers<[1], [0], [0], [1], [0, 0, 1, 1], [], []>} : vector<8x1044xbf16>, vector<1044x128xbf16>, vector<8x128xf32> -> vector<8x128xf32>
    %c0_3 = arith.constant 0 : index
    %c0_4 = arith.constant 0 : index
    %3 = vector.load %arg2[%c0_3, %c0_4] : memref<1x128xf32, #tpu.memory_space<vmem>>, vector<1x128xf32>
    %4 = vector.broadcast %3 : vector<1x128xf32> to vector<8x128xf32>
    %5 = arith.addf %2, %4 : vector<8x128xf32>
    %cst_5 = arith.constant 0.000000e+00 : f32
    %6 = vector.broadcast %cst_5 : f32 to vector<8x128xf32>
    %7 = arith.cmpf oge, %5, %6 : vector<8x128xf32>
    %cst_6 = arith.constant 2.000000e-01 : f32
    %8 = vector.broadcast %cst_6 : f32 to vector<8x128xf32>
    %9 = arith.mulf %8, %5 : vector<8x128xf32>
    %10 = arith.select %7, %5, %9 : vector<8x128xi1>, vector<8x128xf32>
    %11 = arith.truncf %10 : vector<8x128xf32> to vector<8x128xbf16>
    %c0_7 = arith.constant 0 : index
    %c0_8 = arith.constant 0 : index
    %12 = vector.load %arg3[%c0_7, %c0_8] : memref<128x128xbf16, #tpu.memory_space<vmem>>, vector<128x128xbf16>
    %cst_9 = arith.constant dense<0.000000e+00> : vector<8x128xf32>
    %13 = tpu.matmul %11, %12, %cst_9 {dimension_numbers = #tpu.dot_dimension_numbers<[1], [0], [0], [1], [0, 0, 1, 1], [], []>} : vector<8x128xbf16>, vector<128x128xbf16>, vector<8x128xf32> -> vector<8x128xf32>
    %c0_10 = arith.constant 0 : index
    %c0_11 = arith.constant 0 : index
    %14 = vector.load %arg4[%c0_10, %c0_11] : memref<1x128xf32, #tpu.memory_space<vmem>>, vector<1x128xf32>
    %15 = vector.broadcast %14 : vector<1x128xf32> to vector<8x128xf32>
    %16 = arith.addf %13, %15 : vector<8x128xf32>
    %cst_12 = arith.constant 0.000000e+00 : f32
    %17 = vector.broadcast %cst_12 : f32 to vector<8x128xf32>
    %18 = arith.cmpf oge, %16, %17 : vector<8x128xf32>
    %cst_13 = arith.constant 2.000000e-01 : f32
    %19 = vector.broadcast %cst_13 : f32 to vector<8x128xf32>
    %20 = arith.mulf %19, %16 : vector<8x128xf32>
    %21 = arith.select %18, %16, %20 : vector<8x128xi1>, vector<8x128xf32>
    %22 = arith.truncf %21 : vector<8x128xf32> to vector<8x128xbf16>
    %c0_14 = arith.constant 0 : index
    %c0_15 = arith.constant 0 : index
    %23 = vector.load %arg5[%c0_14, %c0_15] : memref<128x128xbf16, #tpu.memory_space<vmem>>, vector<128x128xbf16>
    %cst_16 = arith.constant dense<0.000000e+00> : vector<8x128xf32>
    %24 = tpu.matmul %22, %23, %cst_16 {dimension_numbers = #tpu.dot_dimension_numbers<[1], [0], [0], [1], [0, 0, 1, 1], [], []>} : vector<8x128xbf16>, vector<128x128xbf16>, vector<8x128xf32> -> vector<8x128xf32>
    %c0_17 = arith.constant 0 : index
    %c0_18 = arith.constant 0 : index
    %25 = vector.load %arg6[%c0_17, %c0_18] : memref<1x128xf32, #tpu.memory_space<vmem>>, vector<1x128xf32>
    %26 = vector.broadcast %25 : vector<1x128xf32> to vector<8x128xf32>
    %27 = arith.addf %24, %26 : vector<8x128xf32>
    %c0_19 = arith.constant 0 : index
    %c0_20 = arith.constant 0 : index
    %28 = vector.load %arg7[%c0_19, %c0_20] : memref<8x128xf32, #tpu.memory_space<vmem>>, vector<8x128xf32>
    tpu.vector_store %arg7[%c0_19, %c0_20], %27 {strides = array<i32>} : memref<8x128xf32, #tpu.memory_space<vmem>>, vector<8x128xf32>,
    return
  }
}

</mosaic_0001>

<bundles_post_ra>
// kernel: fwd.6
= control target key start
LH: loop header
LB: loop body
LE: loop exit
PB: predicated region body
PF: predicated region fallthrough
CT: control target
= control target key end

     0   :  { %vm98_vm0 = vcmask 392192   ;;  %s680_s1 = inlined_call_operand.vmem [shape: bf16[48,128], index: 1, kind: input, shape index: {}]   ;;  %s681_s0 = inlined_call_operand.vmem [shape: bf16[128,48], index: 0, kind: input, shape index: {}]   ;;  %s682_s2 = inlined_call_operand.vmem [shape: f32[1,128], index: 2, kind: input, shape index: {}]   ;;  %s683_s3 = inlined_call_operand.vmem [shape: f32[1,128], index: 3, kind: input, shape index: {}]   ;;  %s684_s4 = inlined_call_operand.vmem [shape: bf16[128,128], index: 4, kind: output, shape index: {}]  }
   0x1   :  { %v537_v0 = vld [vmem:[%s680_s1] sm:$0xff]   ;;  %v538_v1 = vld [vmem:[%s680_s1 + $0x8] sm:$0xff]   ;;  %v539_v2 = vld [vmem:[%s680_s1 + $0x10] sm:$0xff]  }
   0x2   :  { %509 = vmatprep.subr.bf16.mxu0 %v537_v0  ;;  %531 = vmatprep.subr.bf16.mxu1 %v537_v0  ;;  %v540_v3 = vld [vmem:[%s681_s0] sm:$0xff]   ;;  %v542_v5 = vld [vmem:[%s681_s0 + $0x8] sm:$0xff]   ;;  %v544_v7 = vld [vmem:[%s681_s0 + $0x10] sm:$0xff]  }
   0x3   :  { %510 = vmatpush3.bf16.msra.mxu0 %v537_v0  ;;  %534 = vmatpush3.bf16.msra.mxu1 %v537_v0  ;;  %v541_v4 = vld [vmem:[%s681_s0 + $0x20] sm:$0xff]   ;;  %v543_v6 = vld [vmem:[%s681_s0 + $0x28] sm:$0xff]   ;;  %v545_v8 = vld [vmem:[%s681_s0 + $0x30] sm:$0xff]  }
   0x4   :  { %511 = vmatprep.subr.bf16.mxu0 %v538_v1  ;;  %532 = vmatprep.subr.bf16.mxu1 %v538_v1  ;;  %v546_v9 = vld [vmem:[%s681_s0 + $0x18] sm:$0xff]   ;;  %v617_v11 = vld [vmem:[%s682_s2] ss:$0 sm:$0xff] }
   0x5   :  { %515 = vmatprep.mubr.msk.bf16.mxu0 %vm98_vm0, %v540_v3  ;;  %523 = vmatprep.mubr.msk.bf16.mxu1 %vm98_vm0, %v541_v4  ;;  %v547_v10 = vld [vmem:[%s681_s0 + $0x38] sm:$0xff]   ;;  %v622_v13 = vld [vmem:[%s683_s3] ss:$0 sm:$0xff] }
   0x7   :  { %512 = vmatpush3.bf16.msra.mxu0 %v538_v1  ;;  %535 = vmatpush3.bf16.msra.mxu1 %v538_v1 }
   0x8   :  { %513 = vmatprep.subr.bf16.mxu0 %v539_v2  ;;  %533 = vmatprep.subr.bf16.mxu1 %v539_v2 }
   0xb   :  { %514 = vmatpush3.bf16.msra.mxu0 %v539_v2  ;;  %536 = vmatpush3.bf16.msra.mxu1 %v539_v2 }
   0xe   :  { %516 = vmatmul.mubr.msk.bf16.vlgmr.msra.gmra.mrb[0].mxu0 %vm98_vm0, %v542_v5  ;;  %524 = vmatmul.mubr.msk.bf16.vlgmr.msra.gmra.mrb[0].mxu1 %vm98_vm0, %v543_v6 }
   0xf   :  { %519 = vmatprep.mubr.msk.bf16.mxu0 %vm98_vm0, %v544_v7  ;;  %527 = vmatprep.mubr.msk.bf16.mxu1 %vm98_vm0, %v545_v8 }
  0x16   :  { %520 = vmatmul.mubr.msk.bf16.gmra.mrb[4].mxu0 %vm98_vm0, %v546_v9  ;;  %528 = vmatmul.mubr.msk.bf16.gmra.mrb[4].mxu1 %vm98_vm0, %v547_v10 }
  0xe1   :  { %v517_v12 = vpop.f32.mrb[0].mxu0  ;;  %v525_v14 = vpop.f32.mrb[0].mxu1 }
  0xe2   :  { %v229_v15 = vmul.f32 %v517_v12, %v617_v11  ;;  %v237_v16 = vmul.f32 %v525_v14, %v617_v11  ;;  %v157_v17 = vpop.f32.mrb[1].mxu0  ;;  %v189_v18 = vpop.f32.mrb[1].mxu1 }
  0xe3   :  { %v227_v19 = vmul.f32 %v617_v11, %v157_v17  ;;  %v235_v20 = vmul.f32 %v617_v11, %v189_v18  ;;  %v518_v21 = vpop.f32.mrb[2].mxu0  ;;  %v526_v22 = vpop.f32.mrb[2].mxu1 }
  0xe4   :  { %v252_v23 = vadd.f32 %v622_v13, %v229_v15  ;;  %v260_v24 = vadd.f32 %v622_v13, %v237_v16  ;;  %v230_v25 = vmul.f32 %v518_v21, %v617_v11  ;;  %v238_v26 = vmul.f32 %v526_v22, %v617_v11  ;;  %v160_v27 = vpop.f32.mrb[3].mxu0  ;;  %v192_v28 = vpop.f32.mrb[3].mxu1 }
  0xe5   :  { %v250_v29 = vadd.f32 %v622_v13, %v227_v19  ;;  %v258_v30 = vadd.f32 %v622_v13, %v235_v20  ;;  %v228_v31 = vmul.f32 %v617_v11, %v160_v27  ;;  %v236_v32 = vmul.f32 %v617_v11, %v192_v28 }
  0xe6   :  { %vm268_vm1 = vcmp.ge.f32.partialorder %v252_v23, 0.0  ;;  %v284_v33 = vmul.f32 0.2, %v252_v23  ;;  %vm276_vm2 = vcmp.ge.f32.partialorder %v260_v24, 0.0  ;;  %v292_v34 = vmul.f32 0.2, %v260_v24 }
  0xe7   :  { %vm266_vm3 = vcmp.ge.f32.partialorder %v250_v29, 0.0  ;;  %v282_v35 = vmul.f32 0.2, %v250_v29  ;;  %vm274_vm4 = vcmp.ge.f32.partialorder %v258_v30, 0.0  ;;  %v290_v36 = vmul.f32 0.2, %v258_v30 }
  0xe8   :  { %v300_v37 = vsel %vm268_vm1, %v252_v23, %v284_v33  ;;  %v308_v38 = vsel %vm276_vm2, %v260_v24, %v292_v34  ;;  %v253_v39 = vadd.f32 %v622_v13, %v230_v25  ;;  %v261_v40 = vadd.f32 %v622_v13, %v238_v26 }
  0xe9   :  { %v298_v41 = vsel %vm266_vm3, %v250_v29, %v282_v35  ;;  %v306_v42 = vsel %vm274_vm4, %v258_v30, %v290_v36  ;;  %v251_v43 = vadd.f32 %v622_v13, %v228_v31  ;;  %v259_v44 = vadd.f32 %v622_v13, %v236_v32  ;;  %v521_v45 = vpop.f32.mrb[4].mxu0  ;;  %v529_v46 = vpop.f32.mrb[4].mxu1 }
  0xea   :  { %vm269_vm5 = vcmp.ge.f32.partialorder %v253_v39, 0.0  ;;  %v285_v47 = vmul.f32 0.2, %v253_v39  ;;  %vm277_vm6 = vcmp.ge.f32.partialorder %v261_v40, 0.0  ;;  %v293_v48 = vmul.f32 0.2, %v261_v40 }
  0xeb   :  { %vm267_vm7 = vcmp.ge.f32.partialorder %v251_v43, 0.0  ;;  %v283_v49 = vmul.f32 0.2, %v251_v43  ;;  %vm275_vm8 = vcmp.ge.f32.partialorder %v259_v44, 0.0  ;;  %v291_v50 = vmul.f32 0.2, %v259_v44 }
  0xec   :  { %v301_v51 = vsel %vm269_vm5, %v253_v39, %v285_v47  ;;  %v309_v52 = vsel %vm277_vm6, %v261_v40, %v293_v48  ;;  %v233_v53 = vmul.f32 %v521_v45, %v617_v11  ;;  %v241_v54 = vmul.f32 %v529_v46, %v617_v11  ;;  %v173_v55 = vpop.f32.mrb[5].mxu0  ;;  %v205_v56 = vpop.f32.mrb[5].mxu1 }
  0xed   :  { %v459_v57 = vpack.c.bf16 %v301_v51, %v300_v37  ;;  %v479_v58 = vpack.c.bf16 %v309_v52, %v308_v38  ;;  %v299_v59 = vsel %vm267_vm7, %v251_v43, %v283_v49  ;;  %v307_v60 = vsel %vm275_vm8, %v259_v44, %v291_v50  ;;  %v522_v61 = vpop.f32.mrb[6].mxu0  ;;  %v530_v62 = vpop.f32.mrb[6].mxu1 }
  0xee   :  { %v454_v63 = vpack.c.bf16 %v299_v59, %v298_v41  ;;  %v474_v0 = vpack.c.bf16 %v307_v60, %v306_v42  ;;  %v256_v1 = vadd.f32 %v622_v13, %v233_v53  ;;  %v264_v2 = vadd.f32 %v622_v13, %v241_v54  ;;  %v176_v3 = vpop.f32.mrb[7].mxu0  ;;  %v208_v4 = vpop.f32.mrb[7].mxu1 }
  0xef   :  { %491 = vst [vmem:[%s684_s4 + $0x8] sm:$0xff] %v459_v57   ;;  %495 = vst [vmem:[%s684_s4 + $0x28] sm:$0xff] %v479_v58   ;;  %v231_v5 = vmul.f32 %v617_v11, %v173_v55  ;;  %v239_v6 = vmul.f32 %v617_v11, %v205_v56  ;;  %v234_v7 = vmul.f32 %v522_v61, %v617_v11 }
  0xf0   :  { %v242_v8 = vmul.f32 %v530_v62, %v617_v11  ;;  %455 = vst [vmem:[%s684_s4] sm:$0xff] %v454_v63   ;;  %494 = vst [vmem:[%s684_s4 + $0x20] sm:$0xff] %v474_v0   ;;  %vm272_vm9 = vcmp.ge.f32.partialorder %v256_v1, 0.0  ;;  %v288_v9 = vmul.f32 0.2, %v256_v1  ;;  %vm280_vm10 = vcmp.ge.f32.partialorder %v264_v2, 0.0 }
  0xf1   :  { %v296_v10 = vmul.f32 0.2, %v264_v2  ;;  %v254_v12 = vadd.f32 %v622_v13, %v231_v5  ;;  %v257_v14 = vadd.f32 %v622_v13, %v234_v7  ;;  %v262_v16 = vadd.f32 %v622_v13, %v239_v6 }
  0xf2   :  { %v265_v15 = vadd.f32 %v622_v13, %v242_v8  ;;  %v232_v17 = vmul.f32 %v617_v11, %v176_v3  ;;  %v240_v18 = vmul.f32 %v617_v11, %v208_v4  ;;  %v304_v19 = vsel %vm272_vm9, %v256_v1, %v288_v9 }
  0xf3   :  { %v312_v20 = vsel %vm280_vm10, %v264_v2, %v296_v10  ;;  %vm273_vm11 = vcmp.ge.f32.partialorder %v257_v14, 0.0  ;;  %v289_v21 = vmul.f32 0.2, %v257_v14  ;;  %vm270_vm13 = vcmp.ge.f32.partialorder %v254_v12, 0.0 }
  0xf4   :  { %vm281_vm12 = vcmp.ge.f32.partialorder %v265_v15, 0.0  ;;  %v297_v22 = vmul.f32 0.2, %v265_v15  ;;  %v286_v23 = vmul.f32 0.2, %v254_v12  ;;  %v255_v24 = vadd.f32 %v622_v13, %v232_v17 }
  0xf5   :  { %v263_v25 = vadd.f32 %v622_v13, %v240_v18  ;;  %vm278_vm14 = vcmp.ge.f32.partialorder %v262_v16, 0.0  ;;  %v294_v26 = vmul.f32 0.2, %v262_v16  ;;  %v305_v27 = vsel %vm273_vm11, %v257_v14, %v289_v21 }
  0xf6   :  { %v313_v28 = vsel %vm281_vm12, %v265_v15, %v297_v22  ;;  %v469_v29 = vpack.c.bf16 %v305_v27, %v304_v19  ;;  %vm271_vm15 = vcmp.ge.f32.partialorder %v255_v24, 0.0  ;;  %v287_v11 = vmul.f32 0.2, %v255_v24 }
  0xf7   :  { %v489_v30 = vpack.c.bf16 %v313_v28, %v312_v20  ;;  %vm279_vm0 = vcmp.ge.f32.partialorder %v263_v25, 0.0  ;;  %v295_v31 = vmul.f32 0.2, %v263_v25  ;;  %v302_v32 = vsel %vm270_vm13, %v254_v12, %v286_v23 }
  0xf8   :  { %493 = vst [vmem:[%s684_s4 + $0x18] sm:$0xff] %v469_v29   ;;  %v303_v13 = vsel %vm271_vm15, %v255_v24, %v287_v11  ;;  %v310_v33 = vsel %vm278_vm14, %v262_v16, %v294_v26 }
  0xf9   :  { %497 = vst [vmem:[%s684_s4 + $0x38] sm:$0xff] %v489_v30   ;;  %v464_v34 = vpack.c.bf16 %v303_v13, %v302_v32  ;;  %v311_v35 = vsel %vm279_vm0, %v263_v25, %v295_v31 }
  0xfa   :  { %v484_v36 = vpack.c.bf16 %v311_v35, %v310_v33 }
  0xfb   :  { %492 = vst [vmem:[%s684_s4 + $0x10] sm:$0xff] %v464_v34  }
  0xfc   :  { %496 = vst [vmem:[%s684_s4 + $0x30] sm:$0xff] %v484_v36  }

// kernel: fwd.7
= control target key start
LH: loop header
LB: loop body
LE: loop exit
PB: predicated region body
PF: predicated region fallthrough
CT: control target
= control target key end

     0   :  { %s796_s1 = inlined_call_operand.vmem [shape: bf16[512,128], index: 1, kind: input, shape index: {}]   ;;  %s797_s0 = inlined_call_operand.vmem [shape: bf16[32,512], index: 0, kind: input, shape index: {}]   ;;  %s798_s2 = inlined_call_operand.vmem [shape: f32[1,128], index: 2, kind: input, shape index: {}]   ;;  %s799_s3 = inlined_call_operand.vmem [shape: f32[1,128], index: 3, kind: input, shape index: {}]   ;;  %s800_s4 = inlined_call_operand.vmem [shape: bf16[32,128], index: 4, kind: output, shape index: {}]  }
   0x1   :  { %v595_v0 = vld [vmem:[%s796_s1 + $0x40] sm:$0xff]   ;;  %v599_v4 = vld [vmem:[%s796_s1 + $0x48] sm:$0xff]   ;;  %v603_v8 = vld [vmem:[%s796_s1 + $0x50] sm:$0xff]  }
   0x2   :  { %v596_v1 = vld [vmem:[%s796_s1 + $0xc0] sm:$0xff]   ;;  %539 = vmatprep.subr.bf16.mxu0 %v595_v0  ;;  %v600_v5 = vld [vmem:[%s796_s1 + $0xc8] sm:$0xff]   ;;  %v604_v9 = vld [vmem:[%s796_s1 + $0xd0] sm:$0xff]  }
   0x3   :  { %v597_v2 = vld [vmem:[%s796_s1] sm:$0xff]   ;;  %567 = vmatprep.subr.bf16.mxu1 %v596_v1  ;;  %v601_v6 = vld [vmem:[%s796_s1 + $0x8] sm:$0xff]   ;;  %v605_v10 = vld [vmem:[%s796_s1 + $0x10] sm:$0xff]  }
   0x4   :  { %v598_v3 = vld [vmem:[%s796_s1 + $0x80] sm:$0xff]   ;;  %540 = vmatpush3.bf16.msra.mxu0 %v597_v2  ;;  %v602_v7 = vld [vmem:[%s796_s1 + $0x88] sm:$0xff]   ;;  %v606_v11 = vld [vmem:[%s796_s1 + $0x90] sm:$0xff]  }
   0x5   :  { %568 = vmatpush3.bf16.msra.mxu1 %v598_v3  ;;  %541 = vmatprep.subr.bf16.mxu0 %v599_v4  ;;  %v607_v12 = vld [vmem:[%s796_s1 + $0x58] sm:$0xff]   ;;  %v611_v16 = vld [vmem:[%s796_s1 + $0x60] sm:$0xff]   ;;  %v615_v20 = vld [vmem:[%s796_s1 + $0x68] sm:$0xff]  }
   0x6   :  { %569 = vmatprep.subr.bf16.mxu1 %v600_v5  ;;  %v608_v13 = vld [vmem:[%s796_s1 + $0xd8] sm:$0xff]   ;;  %v612_v17 = vld [vmem:[%s796_s1 + $0xe0] sm:$0xff]   ;;  %v616_v21 = vld [vmem:[%s796_s1 + $0xe8] sm:$0xff]  }
   0x7   :  { %v609_v14 = vld [vmem:[%s796_s1 + $0x18] sm:$0xff]   ;;  %v613_v18 = vld [vmem:[%s796_s1 + $0x20] sm:$0xff]   ;;  %v617_v22 = vld [vmem:[%s796_s1 + $0x28] sm:$0xff]  }
   0x8   :  { %542 = vmatpush3.bf16.msra.mxu0 %v601_v6  ;;  %v610_v15 = vld [vmem:[%s796_s1 + $0x98] sm:$0xff]   ;;  %v614_v19 = vld [vmem:[%s796_s1 + $0xa0] sm:$0xff]   ;;  %v618_v23 = vld [vmem:[%s796_s1 + $0xa8] sm:$0xff]  }
   0x9   :  { %570 = vmatpush3.bf16.msra.mxu1 %v602_v7  ;;  %543 = vmatprep.subr.bf16.mxu0 %v603_v8  ;;  %v619_v24 = vld [vmem:[%s796_s1 + $0x70] sm:$0xff]   ;;  %v623_v28 = vld [vmem:[%s796_s1 + $0x78] sm:$0xff]   ;;  %v518_v49 = vld [vmem:[%s798_s2] ss:$0 sm:$0xff] }
   0xa   :  { %571 = vmatprep.subr.bf16.mxu1 %v604_v9  ;;  %v620_v25 = vld [vmem:[%s796_s1 + $0xf0] sm:$0xff]   ;;  %v624_v29 = vld [vmem:[%s796_s1 + $0xf8] sm:$0xff]   ;;  %v519_v54 = vld [vmem:[%s799_s3] ss:$0 sm:$0xff] }
   0xb   :  { %v621_v26 = vld [vmem:[%s796_s1 + $0x30] sm:$0xff]   ;;  %v625_v30 = vld [vmem:[%s796_s1 + $0x38] sm:$0xff]  }
   0xc   :  { %544 = vmatpush3.bf16.msra.mxu0 %v605_v10  ;;  %v622_v27 = vld [vmem:[%s796_s1 + $0xb0] sm:$0xff]   ;;  %v626_v31 = vld [vmem:[%s796_s1 + $0xb8] sm:$0xff]  }
   0xd   :  { %572 = vmatpush3.bf16.msra.mxu1 %v606_v11  ;;  %545 = vmatprep.subr.bf16.mxu0 %v607_v12  ;;  %v627_v32 = vld [vmem:[%s797_s0] ss:$16 sps:$4 sm:$0xff]   ;;  %v629_v33 = vld [vmem:[%s797_s0 + $0x4] ss:$16 sps:$4 sm:$0xff]   ;;  %v630_v34 = vld [vmem:[%s797_s0 + $0x8] ss:$16 sps:$4 sm:$0xff]  }
   0xe   :  { %573 = vmatprep.subr.bf16.mxu1 %v608_v13  ;;  %v632_v35 = vld [vmem:[%s797_s0 + $0xc] ss:$16 sps:$4 sm:$0xff]   ;;  %354 = vmatprep.mubr.bf16.mxu0 %v629_v33  ;;  %v633_v36 = vld [vmem:[%s797_s0 + $0x24] ss:$16 sps:$4 sm:$0xff]   ;;  %v637_v38 = vld [vmem:[%s797_s0 + $0x20] ss:$16 sps:$4 sm:$0xff]  }
   0xf   :  { %403 = vmatprep.mubr.bf16.mxu1 %v632_v35  ;;  %v635_v37 = vld [vmem:[%s797_s0 + $0x2c] ss:$16 sps:$4 sm:$0xff]   ;;  %v638_v39 = vld [vmem:[%s797_s0 + $0x28] ss:$16 sps:$4 sm:$0xff]  }
  0x10   :  { %546 = vmatpush3.bf16.msra.mxu0 %v609_v14 }
  0x11   :  { %574 = vmatpush3.bf16.msra.mxu1 %v610_v15  ;;  %547 = vmatprep.subr.bf16.mxu0 %v611_v16 }
  0x12   :  { %575 = vmatprep.subr.bf16.mxu1 %v612_v17 }
  0x14   :  { %548 = vmatpush3.bf16.msra.mxu0 %v613_v18 }
  0x15   :  { %576 = vmatpush3.bf16.msra.mxu1 %v614_v19  ;;  %549 = vmatprep.subr.bf16.mxu0 %v615_v20 }
  0x16   :  { %577 = vmatprep.subr.bf16.mxu1 %v616_v21 }
  0x18   :  { %550 = vmatpush3.bf16.msra.mxu0 %v617_v22 }
  0x19   :  { %578 = vmatpush3.bf16.msra.mxu1 %v618_v23  ;;  %551 = vmatprep.subr.bf16.mxu0 %v619_v24 }
  0x1a   :  { %579 = vmatprep.subr.bf16.mxu1 %v620_v25 }
  0x1c   :  { %552 = vmatpush3.bf16.msra.mxu0 %v621_v26 }
  0x1d   :  { %580 = vmatpush3.bf16.msra.mxu1 %v622_v27  ;;  %553 = vmatprep.subr.bf16.mxu0 %v623_v28 }
  0x1e   :  { %581 = vmatprep.subr.bf16.mxu1 %v624_v29 }
  0x20   :  { %554 = vmatpush3.bf16.msra.mxu0 %v625_v30 }
  0x21   :  { %582 = vmatpush3.bf16.msra.mxu1 %v626_v31 }
  0x23   :  { %355 = vmatmul.mubr.bf16.vlgmr.msra.gmra.mrb[0].mxu0 %v627_v32 }
  0x24   :  { %404 = vmatmul.mubr.bf16.vlgmr.msra.gmra.mrb[0].mxu1 %v630_v34  ;;  %362 = vmatprep.mubr.bf16.mxu0 %v633_v36 }
  0x25   :  { %411 = vmatprep.mubr.bf16.mxu1 %v635_v37 }
  0x2b   :  { %363 = vmatmul.mubr.bf16.gmra.mrb[4].mxu0 %v637_v38 }
  0x2c   :  { %412 = vmatmul.mubr.bf16.gmra.mrb[4].mxu1 %v638_v39 }
  0xf6   :  { %v555_v40 = vpop.f32.mrb[0].mxu0 }
  0xf7   :  { %v583_v41 = vpop.f32.mrb[0].mxu1  ;;  %v556_v42 = vpop.f32.mrb[1].mxu0 }
  0xf8   :  { %v557_v43 = vadd.f32 %v556_v42, %v555_v40  ;;  %v584_v44 = vpop.f32.mrb[1].mxu1  ;;  %v558_v45 = vpop.f32.mrb[2].mxu0 }
  0xf9   :  { %v585_v46 = vadd.f32 %v584_v44, %v583_v41  ;;  %v586_v47 = vpop.f32.mrb[2].mxu1  ;;  %v559_v48 = vpop.f32.mrb[3].mxu0 }
  0xfa   :  { %v560_v50 = vadd.f32 %v559_v48, %v558_v45  ;;  %v587_v51 = vpop.f32.mrb[3].mxu1 }
  0xfb   :  { %v406_v52 = vadd.f32 %v585_v46, %v557_v43  ;;  %v588_v53 = vadd.f32 %v587_v51, %v586_v47 }
  0xfd   :  { %v427_v55 = vmul.f32 %v518_v49, %v406_v52  ;;  %v409_v56 = vadd.f32 %v588_v53, %v560_v50 }
  0xfe   :  { %v561_v57 = vpop.f32.mrb[4].mxu0 }
  0xff   :  { %v438_v58 = vadd.f32 %v519_v54, %v427_v55  ;;  %v428_v59 = vmul.f32 %v518_v49, %v409_v56  ;;  %v589_v60 = vpop.f32.mrb[4].mxu1  ;;  %v562_v61 = vpop.f32.mrb[5].mxu0 }
 0x100   :  { %v563_v62 = vadd.f32 %v562_v61, %v561_v57  ;;  %v590_v63 = vpop.f32.mrb[5].mxu1  ;;  %v564_v0 = vpop.f32.mrb[6].mxu0 }
 0x101   :  { %v446_v1 = vmul.f32 0.2, %v438_v58  ;;  %v439_v2 = vadd.f32 %v519_v54, %v428_v59  ;;  %v591_v3 = vadd.f32 %v590_v63, %v589_v60  ;;  %v592_v4 = vpop.f32.mrb[6].mxu1  ;;  %v565_v5 = vpop.f32.mrb[7].mxu0  ;;  %vm442_vm0 = vcmp.ge.f32.partialorder %v438_v58, 0.0 }
 0x102   :  { %v566_v6 = vadd.f32 %v565_v5, %v564_v0  ;;  %v593_v7 = vpop.f32.mrb[7].mxu1 }
 0x103   :  { %vm443_vm1 = vcmp.ge.f32.partialorder %v439_v2, 0.0  ;;  %v447_v8 = vmul.f32 0.2, %v439_v2  ;;  %v414_v9 = vadd.f32 %v591_v3, %v563_v62  ;;  %v594_v10 = vadd.f32 %v593_v7, %v592_v4 }
 0x104   :  { %v450_v11 = vsel %vm442_vm0, %v438_v58, %v446_v1 }
 0x105   :  { %v451_v12 = vsel %vm443_vm1, %v439_v2, %v447_v8  ;;  %v429_v13 = vmul.f32 %v518_v49, %v414_v9  ;;  %v417_v15 = vadd.f32 %v594_v10, %v566_v6 }
 0x106   :  { %v531_v14 = vpack.c.bf16 %v451_v12, %v450_v11 }
 0x107   :  { %v440_v16 = vadd.f32 %v519_v54, %v429_v13  ;;  %v430_v17 = vmul.f32 %v518_v49, %v417_v15 }
 0x108   :  { %532 = vst [vmem:[%s800_s4] sm:$0xff] %v531_v14  }
 0x109   :  { %v448_v18 = vmul.f32 0.2, %v440_v16  ;;  %v441_v19 = vadd.f32 %v519_v54, %v430_v17  ;;  %vm444_vm2 = vcmp.ge.f32.partialorder %v440_v16, 0.0 }
 0x10b   :  { %vm445_vm3 = vcmp.ge.f32.partialorder %v441_v19, 0.0  ;;  %v449_v20 = vmul.f32 0.2, %v441_v19  ;;  %v452_v21 = vsel %vm444_vm2, %v440_v16, %v448_v18 }
 0x10d   :  { %v453_v22 = vsel %vm445_vm3, %v441_v19, %v449_v20 }
 0x10e   :  { %v536_v23 = vpack.c.bf16 %v453_v22, %v452_v21 }
 0x110   :  { %538 = vst [vmem:[%s800_s4 + $0x8] sm:$0xff] %v536_v23  }

// kernel: fwd.8
= control target key start
LH: loop header
LB: loop body
LE: loop exit
PB: predicated region body
PF: predicated region fallthrough
CT: control target
= control target key end

     0   :  { %vm88_vm0 = vcmask 523264   ;;  %vm320_vm1 = vcmask 64512   ;;  %vm495_vm3 = vcmask 130048   ;;  %vm728_vm4 = vcmask 519168   ;;  %s1083_s2 = inlined_call_operand.vmem [shape: bf16[64,8], index: 2, kind: input, shape index: {}]   ;;  %s1084_s1 = inlined_call_operand.vmem [shape: bf16[64,8], index: 1, kind: input, shape index: {}]   ;;  %s1085_s0 = inlined_call_operand.vmem [shape: bf16[32,64], index: 0, kind: input, shape index: {}]   ;;  %s1086_s5 = inlined_call_operand.vmem [shape: f32[1,8], index: 5, kind: input, shape index: {}]   ;;  %s1087_s4 = inlined_call_operand.vmem [shape: f32[1,8], index: 4, kind: input, shape index: {}]   ;;  %s1088_s3 = inlined_call_operand.vmem [shape: bf16[64,64], index: 3, kind: input, shape index: {}]   ;;  %s1089_s6 = inlined_call_operand.vmem [shape: f32[1,64], index: 6, kind: input, shape index: {}]   ;;  %s1090_s7 = inlined_call_operand.<no memory space> [shape: f32[1], index: 7, kind: input, shape index: {}]   ;;  %s1091_s8 = inlined_call_operand.vmem [shape: bf16[32,64], index: 8, kind: output, shape index: {}]  }
   0x1   :  { %v898_v0 = vld [vmem:[%s1083_s2] sm:$0xff]   ;;  %v899_v1 = vld [vmem:[%s1083_s2 + $0x8] sm:$0xff]   ;;  %v901_v3 = vld [vmem:[%s1083_s2 + $0x10] sm:$0xff]  }
   0x2   :  { %826 = vmatprep.subr.bf16.mxu1 %v898_v0  ;;  %v900_v2 = vld [vmem:[%s1084_s1] sm:$0xff]   ;;  %v902_v4 = vld [vmem:[%s1084_s1 + $0x8] sm:$0xff]   ;;  %v905_v6 = vld [vmem:[%s1084_s1 + $0x10] sm:$0xff]  }
   0x3   :  { %827 = vmatpush3.bf16.msra.mxu1 %v898_v0  ;;  %814 = vmatprep.subr.bf16.mxu0 %v900_v2  ;;  %v993_v5 = vld [vmem:[%s1085_s0] sm:$0xff]   ;;  %v903_v7 = vld [vmem:[%s1083_s2 + $0x18] sm:$0xff]   ;;  %v1011_v9 = vld [vmem:[%s1085_s0 + $0x8] sm:$0xff]  }
   0x4   :  { %828 = vmatprep.subr.bf16.mxu1 %v899_v1  ;;  %815 = vmatpush3.bf16.msra.mxu0 %v900_v2  ;;  %v907_v8 = vld [vmem:[%s1084_s1 + $0x18] sm:$0xff]   ;;  %v746_v11 = vld [vmem:[%s1086_s5] ss:$0 sm:$0xff]  ;;  %vm879_vm2 = vmpackc.low %vm320_vm1, %vm320_vm1 }
   0x5   :  { %816 = vmatprep.subr.bf16.mxu0 %v902_v4  ;;  %834 = vmatprep.mubr.msk.bf16.mxu1 %vm88_vm0, %v993_v5  ;;  %v737_v13 = vld [vmem:[%s1087_s4] ss:$0 sm:$0xff]  ;;  %v909_v31 = vld [vmem:[%s1088_s3 + $0x8] sm:$0xff]   ;;  %v910_v32 = vld [vmem:[%s1088_s3 + $0x10] sm:$0xff]  }
   0x6   :  { %822 = vmatprep.mubr.msk.bf16.mxu0 %vm88_vm0, %v993_v5  ;;  %v908_v30 = vld [vmem:[%s1088_s3] sm:$0xff]   ;;  %v911_v33 = vld [vmem:[%s1088_s3 + $0x18] sm:$0xff]  }
   0x7   :  { %829 = vmatpush3.bf16.msra.mxu1 %v899_v1  ;;  %v753_v1 = vld [vmem:[%s1089_s6] ss:$0 sm:$0xff] }
   0x8   :  { %830 = vmatprep.subr.bf16.mxu1 %v901_v3  ;;  %817 = vmatpush3.bf16.msra.mxu0 %v902_v4 }
   0x9   :  { %818 = vmatprep.subr.bf16.mxu0 %v905_v6 }
   0xb   :  { %831 = vmatpush3.bf16.msra.mxu1 %v901_v3 }
   0xc   :  { %832 = vmatprep.subr.bf16.mxu1 %v903_v7  ;;  %819 = vmatpush3.bf16.msra.mxu0 %v905_v6 }
   0xd   :  { %820 = vmatprep.subr.bf16.mxu0 %v907_v8 }
   0xf   :  { %833 = vmatpush3.bf16.msra.mxu1 %v903_v7 }
  0x10   :  { %821 = vmatpush3.bf16.msra.mxu0 %v907_v8 }
  0x11   :  { %838 = vmatprep.subr.bf16.mxu0 %v908_v30 }
  0x12   :  { %835 = vmatmul.mubr.msk.bf16.vlgmr.msra.gmra.mrb[0].mxu1 %vm88_vm0, %v1011_v9 }
  0x13   :  { %823 = vmatmul.mubr.msk.bf16.vlgmr.msra.gmra.mrb[0].mxu0 %vm88_vm0, %v1011_v9 }
  0x14   :  { %846 = vmatprep.mubr.msk.bf16.mxu0 %vm88_vm0, %v993_v5  ;;  %839 = vmatpush3.bf16.msra.mxu0 %v908_v30 }
  0x15   :  { %840 = vmatprep.subr.bf16.mxu0 %v909_v31 }
  0x18   :  { %841 = vmatpush3.bf16.msra.mxu0 %v909_v31 }
  0x19   :  { %842 = vmatprep.subr.bf16.mxu0 %v910_v32 }
  0x1c   :  { %843 = vmatpush3.bf16.msra.mxu0 %v910_v32 }
  0x1d   :  { %844 = vmatprep.subr.bf16.mxu0 %v911_v33 }
  0x20   :  { %845 = vmatpush3.bf16.msra.mxu0 %v911_v33 }
  0x23   :  { %847 = vmatmul.mubr.msk.bf16.vlgmr.msra.gmra.mrb[4].mxu0 %vm88_vm0, %v1011_v9 }
  0xe5   :  { %v836_v10 = vpop.f32.mrb[0].mxu1 }
  0xe6   :  { %v217_v12 = vpop.f32.mrb[1].mxu1  ;;  %v824_v15 = vpop.f32.mrb[0].mxu0  ;;  %v226_v16 = vadd.f32 %v836_v10, %v746_v11 }
  0xe7   :  { %v837_v14 = vpop.f32.mrb[2].mxu1  ;;  %v129_v19 = vpop.f32.mrb[1].mxu0  ;;  %v218_v20 = vadd.f32 %v746_v11, %v217_v12  ;;  %v138_v28 = vadd.f32 %v824_v15, %v737_v13 }
  0xe8   :  { %v229_v17 = vadd.f32 %v837_v14, %v746_v11  ;;  %v220_v18 = vpop.f32.mrb[3].mxu1  ;;  %v130_v22 = vadd.f32 %v737_v13, %v129_v19  ;;  %v825_v23 = vpop.f32.mrb[2].mxu0 }
  0xe9   :  { %v221_v21 = vadd.f32 %v746_v11, %v220_v18  ;;  %v132_v25 = vpop.f32.mrb[3].mxu0  ;;  %v141_v29 = vadd.f32 %v825_v23, %v737_v13  ;;  %v703_v23 = vstv %s1090_s7 }
  0xea   :  { %v884_v24 = vpack.c.bf16 %v229_v17, %v226_v16  ;;  %854 = vmatprep.mubr.msk.f32.mxu1 %vm320_vm1, %v130_v22  ;;  %v133_v27 = vadd.f32 %v737_v13, %v132_v25 }
  0xeb   :  { %v878_v26 = vpack.c.bf16 %v221_v21, %v218_v20 }
  0xed   :  { %880 = vmatprep.subr.msk.bf16.mxu1 %vm879_vm2, %v878_v26 }
  0xee   :  { %883 = vmatpush3.bf16.xpose.msk.msra.mxu1 %vm879_vm2, %v878_v26  ;;  %v35_v26 = vunpack.c.l.bf16 %v993_v5 }
  0xef   :  { %886 = vmatprep.subr.msk.bf16.mxu1 %vm879_vm2, %v884_v24 }
  0xf5   :  { %855 = vmatmul.mubr.msk.f32.vlgmr.msra.gmra.mrb[4].mxu1 %vm320_vm1, %v133_v27 }
  0xf6   :  { %889 = vmatpush3.bf16.xpose.msk.msra.mxu1 %vm879_vm2, %v884_v24  ;;  %861 = vmatprep.mubr.msk.f32.mxu1 %vm320_vm1, %v138_v28  ;;  %v848_v62 = vpop.f32.mrb[4].mxu0  ;;  %v36_v24 = vunpack.c.h.bf16 %v993_v5 }
  0xf7   :  { %v305_v63 = vpop.f32.mrb[5].mxu0  ;;  %v314_v7 = vadd.f32 %v848_v62, %v753_v1 }
  0xf8   :  { %v849_v0 = vpop.f32.mrb[6].mxu0  ;;  %v306_v3 = vadd.f32 %v753_v1, %v305_v63 }
  0xf9   :  { %v308_v2 = vpop.f32.mrb[7].mxu0  ;;  %v317_v8 = vadd.f32 %v849_v0, %v753_v1 }
  0xfa   :  { %v309_v4 = vadd.f32 %v753_v1, %v308_v2 }
  0xfb   :  { %v894_v10 = vpack.c.bf16 %v317_v8, %v314_v7 }
  0xfc   :  { %v890_v6 = vpack.c.bf16 %v309_v4, %v306_v3 }
  0xfd   :  { %862 = vmatmul.mubr.msk.f32.vlgmr.msra.gmra.mrb[6].mxu1 %vm320_vm1, %v141_v29  ;;  %895 = vmatprep.subr.bf16.mxu0 %v894_v10 }
  0xfe   :  { %891 = vmatprep.subr.bf16.mxu1 %v890_v6  ;;  %897 = vmatpush3.bf16.msra.mxu0 %v894_v10 }
  0xff   :  { %893 = vmatpush3.bf16.msra.mxu1 %v890_v6 }
 0x1c8   :  { %v856_v34 = vpop.f32.mrb[4].mxu1 }
 0x1c9   :  { %v399_v35 = vpop.f32.mrb[5].mxu1  ;;  %v499_v36 = vsel %vm495_vm3, %v856_v34, -inf }
 0x1ca   :  { %500 = vmax.xlane.f32.xlu1 %v499_v36  ;;  %v496_v37 = vsel %vm495_vm3, %v399_v35, -inf }
 0x1cb   :  { %497 = vmax.xlane.f32.xlu0 %v496_v37 }
 0x1d0   :  { %v863_v38 = vpop.f32.mrb[6].mxu1 }
 0x1d1   :  { %v486_v39 = vpop.f32.mrb[7].mxu1  ;;  %v505_v40 = vsel %vm495_vm3, %v863_v38, -inf }
 0x1d2   :  { %506 = vmax.xlane.f32.xlu1 %v505_v40  ;;  %v502_v41 = vsel %vm495_vm3, %v486_v39, -inf }
 0x1d3   :  { %503 = vmax.xlane.f32.xlu0 %v502_v41 }
 0x257   :  { %v501_v42 = vpop.xlane.xlu1 %500 }
 0x258   :  { %v509_v43 = vsub.f32 %v856_v34, %v501_v42  ;;  %v498_v44 = vpop.xlane.xlu0 %497  ;;  %v38_v34 = vunpack.c.h.bf16 %v1011_v9 }
 0x259   :  { %v508_v45 = vsub.f32 %v399_v35, %v498_v44  ;;  %v37_v35 = vunpack.c.l.bf16 %v1011_v9 }
 0x25a   :  { %v514_v46 = vmul.f32 1.442695, %v509_v43 }
 0x25b   :  { %v512_v47 = vmul.f32 1.442695, %v508_v45 }
 0x25d   :  { %914 = vpow2.f32 %v512_v47 }
 0x25e   :  { %916 = vpow2.f32 %v514_v46 }
 0x25f   :  { %v507_v48 = vpop.xlane.xlu1 %506 }
 0x260   :  { %v511_v49 = vsub.f32 %v863_v38, %v507_v48  ;;  %v504_v50 = vpop.xlane.xlu0 %503 }
 0x261   :  { %v510_v51 = vsub.f32 %v486_v39, %v504_v50 }
 0x262   :  { %v518_v52 = vmul.f32 1.442695, %v511_v49 }
 0x263   :  { %v516_v53 = vmul.f32 1.442695, %v510_v51 }
 0x265   :  { %918 = vpow2.f32 %v516_v53 }
 0x266   :  { %920 = vpow2.f32 %v518_v52 }
 0x267   :  { %v915_v54 = vpop.eup %914 }
 0x268   :  { %v520_v55 = vsel %vm495_vm3, %v915_v54, 0.0  ;;  %v917_v56 = vpop.eup %916 }
 0x269   :  { %521 = vadd.xlane.f32.xlu0 %v520_v55  ;;  %v523_v57 = vsel %vm495_vm3, %v917_v56, 0.0 }
 0x26d   :  { %524 = vadd.xlane.f32.xlu0 %v523_v57 }
 0x26f   :  { %v919_v58 = vpop.eup %918 }
 0x270   :  { %v526_v59 = vsel %vm495_vm3, %v919_v58, 0.0  ;;  %v921_v60 = vpop.eup %920 }
 0x271   :  { %527 = vadd.xlane.f32.xlu1 %v526_v59  ;;  %v529_v61 = vsel %vm495_vm3, %v921_v60, 0.0 }
 0x275   :  { %530 = vadd.xlane.f32.xlu1 %v529_v61 }
 0x2f6   :  { %v522_v11 = vpop.xlane.xlu0 %521 }
 0x2f7   :  { %922 = vrcp.f32 %v522_v11 }
 0x2fa   :  { %v525_v12 = vpop.xlane.xlu0 %524 }
 0x2fb   :  { %924 = vrcp.f32 %v525_v12 }
 0x2fe   :  { %v528_v13 = vpop.xlane.xlu1 %527 }
 0x2ff   :  { %926 = vrcp.f32 %v528_v13 }
 0x301   :  { %v923_v14 = vpop.eup %922 }
 0x302   :  { %v531_v15 = vpop.xlane.xlu1 %530  ;;  %v536_v16 = vmul.f32 %v923_v14, %v915_v54 }
 0x303   :  { %928 = vrcp.f32 %v531_v15 }
 0x304   :  { %868 = vmatprep.mubr.msk.f32.mxu1 %vm495_vm3, %v536_v16 }
 0x305   :  { %v925_v17 = vpop.eup %924 }
 0x306   :  { %v537_v18 = vmul.f32 %v925_v17, %v917_v56 }
 0x308   :  { %869 = vmatmul.mubr.msk.f32.vlgmr.msra.gmra.mrb[8].mxu1 %vm495_vm3, %v537_v18 }
 0x309   :  { %v927_v19 = vpop.eup %926 }
 0x30a   :  { %v538_v20 = vmul.f32 %v927_v19, %v919_v58 }
 0x30c   :  { %875 = vmatprep.mubr.msk.f32.mxu0 %vm495_vm3, %v538_v20 }
 0x30d   :  { %v929_v21 = vpop.eup %928 }
 0x30e   :  { %v539_v22 = vmul.f32 %v929_v21, %v921_v60 }
 0x310   :  { %876 = vmatmul.mubr.msk.f32.vlgmr.msra.gmra.mrb[8].mxu0 %vm495_vm3, %v539_v22 }
 0x3db   :  { %v870_v25 = vpop.f32.mrb[8].mxu1 }
 0x3dc   :  { %v705_v27 = vmul.f32 %v870_v25, %v703_v23  ;;  %v612_v28 = vpop.f32.mrb[9].mxu1 }
 0x3dd   :  { %v704_v29 = vmul.f32 %v703_v23, %v612_v28 }
 0x3de   :  { %v709_v30 = vadd.f32 %v705_v27, %v36_v24 }
 0x3df   :  { %v708_v31 = vadd.f32 %v704_v29, %v35_v26 }
 0x3e0   :  { %v777_v32 = vpack.c.bf16 %v709_v30, %v709_v30 }
 0x3e1   :  { %v776_v33 = vpack.c.bf16 %v708_v31, %v708_v31 }
 0x3e2   :  { %730 = vst.msk [vmem:[%s1091_s8 + $0x4] sm:$0xf] %vm728_vm4, %v777_v32 }
 0x3e3   :  { %729 = vst.msk [vmem:[%s1091_s8] sm:$0xf] %vm728_vm4, %v776_v33  ;;  %v877_v5 = vpop.f32.mrb[8].mxu0 }
 0x3e4   :  { %v707_v36 = vmul.f32 %v877_v5, %v703_v23  ;;  %v693_v37 = vpop.f32.mrb[9].mxu0 }
 0x3e5   :  { %v706_v38 = vmul.f32 %v703_v23, %v693_v37 }
 0x3e6   :  { %v711_v39 = vadd.f32 %v707_v36, %v38_v34 }
 0x3e7   :  { %v710_v40 = vadd.f32 %v706_v38, %v37_v35 }
 0x3e8   :  { %v779_v41 = vpack.c.bf16 %v711_v39, %v711_v39 }
 0x3e9   :  { %v778_v42 = vpack.c.bf16 %v710_v40, %v710_v40 }
 0x3ea   :  { %732 = vst.msk [vmem:[%s1091_s8 + $0xc] sm:$0xf] %vm728_vm4, %v779_v41 }
 0x3eb   :  { %731 = vst.msk [vmem:[%s1091_s8 + $0x8] sm:$0xf] %vm728_vm4, %v778_v42 }

// kernel: fwd.9
= control target key start
LH: loop header
LB: loop body
LE: loop exit
PB: predicated region body
PF: predicated region fallthrough
CT: control target
= control target key end

     0   :  { %s1219_s1 = inlined_call_operand.vmem [shape: bf16[1024,128], index: 1, kind: input, shape index: {}]   ;;  %s1220_s0 = inlined_call_operand.vmem [shape: bf16[8,1024], index: 0, kind: input, shape index: {}]   ;;  %s1221_s2 = inlined_call_operand.vmem [shape: f32[1,128], index: 2, kind: input, shape index: {}]   ;;  %s1222_s3 = inlined_call_operand.vmem [shape: f32[1,128], index: 3, kind: input, shape index: {}]   ;;  %s1223_s4 = inlined_call_operand.vmem [shape: bf16[8,128], index: 4, kind: output, shape index: {}]  }
   0x1   :  { %v909_v0 = vld [vmem:[%s1219_s1 + $0x40] sm:$0xff]   ;;  %v913_v4 = vld [vmem:[%s1219_s1 + $0x48] sm:$0xff]   ;;  %v917_v8 = vld [vmem:[%s1219_s1 + $0x50] sm:$0xff]  }
   0x2   :  { %v910_v1 = vld [vmem:[%s1219_s1 + $0xc0] sm:$0xff]   ;;  %821 = vmatprep.subr.bf16.mxu0 %v909_v0  ;;  %v914_v5 = vld [vmem:[%s1219_s1 + $0xc8] sm:$0xff]   ;;  %v918_v9 = vld [vmem:[%s1219_s1 + $0xd0] sm:$0xff]  }
   0x3   :  { %v911_v2 = vld [vmem:[%s1219_s1] sm:$0xff]   ;;  %843 = vmatprep.subr.bf16.mxu1 %v910_v1  ;;  %v915_v6 = vld [vmem:[%s1219_s1 + $0x8] sm:$0xff]   ;;  %v919_v10 = vld [vmem:[%s1219_s1 + $0x10] sm:$0xff]  }
   0x4   :  { %v912_v3 = vld [vmem:[%s1219_s1 + $0x80] sm:$0xff]   ;;  %822 = vmatpush3.bf16.msra.mxu0 %v911_v2  ;;  %v916_v7 = vld [vmem:[%s1219_s1 + $0x88] sm:$0xff]   ;;  %v920_v11 = vld [vmem:[%s1219_s1 + $0x90] sm:$0xff]  }
   0x5   :  { %844 = vmatpush3.bf16.msra.mxu1 %v912_v3  ;;  %823 = vmatprep.subr.bf16.mxu0 %v913_v4  ;;  %v921_v12 = vld [vmem:[%s1219_s1 + $0x58] sm:$0xff]   ;;  %v925_v16 = vld [vmem:[%s1219_s1 + $0x60] sm:$0xff]   ;;  %v929_v20 = vld [vmem:[%s1219_s1 + $0x68] sm:$0xff]  }
   0x6   :  { %845 = vmatprep.subr.bf16.mxu1 %v914_v5  ;;  %v922_v13 = vld [vmem:[%s1219_s1 + $0xd8] sm:$0xff]   ;;  %v926_v17 = vld [vmem:[%s1219_s1 + $0xe0] sm:$0xff]   ;;  %v930_v21 = vld [vmem:[%s1219_s1 + $0xe8] sm:$0xff]  }
   0x7   :  { %v923_v14 = vld [vmem:[%s1219_s1 + $0x18] sm:$0xff]   ;;  %v927_v18 = vld [vmem:[%s1219_s1 + $0x20] sm:$0xff]   ;;  %v931_v22 = vld [vmem:[%s1219_s1 + $0x28] sm:$0xff]  }
   0x8   :  { %824 = vmatpush3.bf16.msra.mxu0 %v915_v6  ;;  %v924_v15 = vld [vmem:[%s1219_s1 + $0x98] sm:$0xff]   ;;  %v928_v19 = vld [vmem:[%s1219_s1 + $0xa0] sm:$0xff]   ;;  %v932_v23 = vld [vmem:[%s1219_s1 + $0xa8] sm:$0xff]  }
   0x9   :  { %846 = vmatpush3.bf16.msra.mxu1 %v916_v7  ;;  %825 = vmatprep.subr.bf16.mxu0 %v917_v8  ;;  %v933_v24 = vld [vmem:[%s1219_s1 + $0x70] sm:$0xff]   ;;  %v937_v28 = vld [vmem:[%s1219_s1 + $0x78] sm:$0xff]   ;;  %v18_v32 = vld [vmem:[%s1220_s0] sm:$0xff] }
   0xa   :  { %847 = vmatprep.subr.bf16.mxu1 %v918_v9  ;;  %v934_v25 = vld [vmem:[%s1219_s1 + $0xf0] sm:$0xff]   ;;  %v938_v29 = vld [vmem:[%s1219_s1 + $0xf8] sm:$0xff]   ;;  %v19_v33 = vld [vmem:[%s1220_s0 + $0x8] sm:$0xff]  ;;  %v747_v34 = vcombine.low %v18_v32, %v18_v32  ;;  %v748_v35 = vcombine.high %v18_v32, %v18_v32 }
   0xb   :  { %v935_v26 = vld [vmem:[%s1219_s1 + $0x30] sm:$0xff]   ;;  %v939_v30 = vld [vmem:[%s1219_s1 + $0x38] sm:$0xff]   ;;  %v749_v36 = vcombine.low %v19_v33, %v19_v33  ;;  %v750_v37 = vcombine.high %v19_v33, %v19_v33  ;;  %v945_v38 = vld [vmem:[%s1219_s1 + $0x140] sm:$0xff]  }
   0xc   :  { %826 = vmatpush3.bf16.msra.mxu0 %v919_v10  ;;  %v936_v27 = vld [vmem:[%s1219_s1 + $0xb0] sm:$0xff]   ;;  %v940_v31 = vld [vmem:[%s1219_s1 + $0xb8] sm:$0xff]   ;;  %v946_v39 = vld [vmem:[%s1219_s1 + $0x1c0] sm:$0xff]   ;;  %594 = vmatprep.mubr.bf16.mxu0 %v748_v35 }
   0xd   :  { %848 = vmatpush3.bf16.msra.mxu1 %v920_v11  ;;  %827 = vmatprep.subr.bf16.mxu0 %v921_v12  ;;  %v947_v40 = vld [vmem:[%s1219_s1 + $0x100] sm:$0xff]   ;;  %v949_v42 = vld [vmem:[%s1219_s1 + $0x148] sm:$0xff]   ;;  %v953_v46 = vld [vmem:[%s1219_s1 + $0x150] sm:$0xff]  }
   0xe   :  { %849 = vmatprep.subr.bf16.mxu1 %v922_v13  ;;  %634 = vmatprep.mubr.bf16.mxu1 %v750_v37  ;;  %v948_v41 = vld [vmem:[%s1219_s1 + $0x180] sm:$0xff]   ;;  %v950_v43 = vld [vmem:[%s1219_s1 + $0x1c8] sm:$0xff]   ;;  %v954_v47 = vld [vmem:[%s1219_s1 + $0x1d0] sm:$0xff]  }
   0xf   :  { %v951_v44 = vld [vmem:[%s1219_s1 + $0x108] sm:$0xff]   ;;  %v955_v48 = vld [vmem:[%s1219_s1 + $0x110] sm:$0xff]   ;;  %v957_v50 = vld [vmem:[%s1219_s1 + $0x158] sm:$0xff]  }
  0x10   :  { %828 = vmatpush3.bf16.msra.mxu0 %v923_v14  ;;  %v952_v45 = vld [vmem:[%s1219_s1 + $0x188] sm:$0xff]   ;;  %v956_v49 = vld [vmem:[%s1219_s1 + $0x190] sm:$0xff]   ;;  %v958_v51 = vld [vmem:[%s1219_s1 + $0x1d8] sm:$0xff]  }
  0x11   :  { %850 = vmatpush3.bf16.msra.mxu1 %v924_v15  ;;  %829 = vmatprep.subr.bf16.mxu0 %v925_v16  ;;  %v959_v52 = vld [vmem:[%s1219_s1 + $0x118] sm:$0xff]   ;;  %v961_v54 = vld [vmem:[%s1219_s1 + $0x160] sm:$0xff]   ;;  %v965_v58 = vld [vmem:[%s1219_s1 + $0x168] sm:$0xff]  }
  0x12   :  { %851 = vmatprep.subr.bf16.mxu1 %v926_v17  ;;  %v960_v53 = vld [vmem:[%s1219_s1 + $0x198] sm:$0xff]   ;;  %v962_v55 = vld [vmem:[%s1219_s1 + $0x1e0] sm:$0xff]   ;;  %v966_v59 = vld [vmem:[%s1219_s1 + $0x1e8] sm:$0xff]  }
  0x13   :  { %v963_v56 = vld [vmem:[%s1219_s1 + $0x120] sm:$0xff]   ;;  %v967_v60 = vld [vmem:[%s1219_s1 + $0x128] sm:$0xff]   ;;  %v969_v62 = vld [vmem:[%s1219_s1 + $0x170] sm:$0xff]  }
  0x14   :  { %830 = vmatpush3.bf16.msra.mxu0 %v927_v18  ;;  %v964_v57 = vld [vmem:[%s1219_s1 + $0x1a0] sm:$0xff]   ;;  %v968_v61 = vld [vmem:[%s1219_s1 + $0x1a8] sm:$0xff]   ;;  %v970_v63 = vld [vmem:[%s1219_s1 + $0x1f0] sm:$0xff]  }
  0x15   :  { %852 = vmatpush3.bf16.msra.mxu1 %v928_v19  ;;  %831 = vmatprep.subr.bf16.mxu0 %v929_v20  ;;  %v971_v0 = vld [vmem:[%s1219_s1 + $0x130] sm:$0xff]   ;;  %v973_v2 = vld [vmem:[%s1219_s1 + $0x178] sm:$0xff]  }
  0x16   :  { %853 = vmatprep.subr.bf16.mxu1 %v930_v21  ;;  %v972_v1 = vld [vmem:[%s1219_s1 + $0x1b0] sm:$0xff]   ;;  %v974_v3 = vld [vmem:[%s1219_s1 + $0x1f8] sm:$0xff]  }
  0x17   :  { %v975_v4 = vld [vmem:[%s1219_s1 + $0x138] sm:$0xff]   ;;  %v20_v6 = vld [vmem:[%s1220_s0 + $0x10] sm:$0xff] }
  0x18   :  { %832 = vmatpush3.bf16.msra.mxu0 %v931_v22  ;;  %v976_v5 = vld [vmem:[%s1219_s1 + $0x1b8] sm:$0xff]   ;;  %v751_v7 = vcombine.low %v20_v6, %v20_v6  ;;  %v752_v8 = vcombine.high %v20_v6, %v20_v6 }
  0x19   :  { %854 = vmatpush3.bf16.msra.mxu1 %v932_v23  ;;  %833 = vmatprep.subr.bf16.mxu0 %v933_v24  ;;  %v21_v9 = vld [vmem:[%s1220_s0 + $0x18] sm:$0xff] }
  0x1a   :  { %855 = vmatprep.subr.bf16.mxu1 %v934_v25  ;;  %v753_v10 = vcombine.low %v21_v9, %v21_v9  ;;  %v754_v11 = vcombine.high %v21_v9, %v21_v9 }
  0x1c   :  { %834 = vmatpush3.bf16.msra.mxu0 %v935_v26 }
  0x1d   :  { %856 = vmatpush3.bf16.msra.mxu1 %v936_v27  ;;  %835 = vmatprep.subr.bf16.mxu0 %v937_v28 }
  0x1e   :  { %857 = vmatprep.subr.bf16.mxu1 %v938_v29 }
  0x20   :  { %836 = vmatpush3.bf16.msra.mxu0 %v939_v30 }
  0x21   :  { %858 = vmatpush3.bf16.msra.mxu1 %v940_v31  ;;  %865 = vmatprep.subr.bf16.mxu0 %v945_v38 }
  0x22   :  { %887 = vmatprep.subr.bf16.mxu1 %v946_v39 }
  0x23   :  { %595 = vmatmul.mubr.bf16.vlgmr.msra.gmra.mrb[0].mxu0 %v747_v34  ;;  %v819_v34 = vld [vmem:[%s1221_s2] ss:$0 sm:$0xff] }
  0x24   :  { %635 = vmatmul.mubr.bf16.vlgmr.msra.gmra.mrb[0].mxu1 %v749_v36  ;;  %866 = vmatpush3.bf16.msra.mxu0 %v947_v40  ;;  %v820_v36 = vld [vmem:[%s1222_s3] ss:$0 sm:$0xff] }
  0x25   :  { %888 = vmatpush3.bf16.msra.mxu1 %v948_v41  ;;  %867 = vmatprep.subr.bf16.mxu0 %v949_v42 }
  0x26   :  { %889 = vmatprep.subr.bf16.mxu1 %v950_v43  ;;  %674 = vmatprep.mubr.bf16.mxu0 %v752_v8 }
  0x27   :  { %714 = vmatprep.mubr.bf16.mxu1 %v754_v11 }
  0x28   :  { %868 = vmatpush3.bf16.msra.mxu0 %v951_v44 }
  0x29   :  { %890 = vmatpush3.bf16.msra.mxu1 %v952_v45  ;;  %869 = vmatprep.subr.bf16.mxu0 %v953_v46 }
  0x2a   :  { %891 = vmatprep.subr.bf16.mxu1 %v954_v47 }
  0x2c   :  { %870 = vmatpush3.bf16.msra.mxu0 %v955_v48 }
  0x2d   :  { %892 = vmatpush3.bf16.msra.mxu1 %v956_v49  ;;  %871 = vmatprep.subr.bf16.mxu0 %v957_v50 }
  0x2e   :  { %893 = vmatprep.subr.bf16.mxu1 %v958_v51 }
  0x30   :  { %872 = vmatpush3.bf16.msra.mxu0 %v959_v52 }
  0x31   :  { %894 = vmatpush3.bf16.msra.mxu1 %v960_v53  ;;  %873 = vmatprep.subr.bf16.mxu0 %v961_v54 }
  0x32   :  { %895 = vmatprep.subr.bf16.mxu1 %v962_v55 }
  0x34   :  { %874 = vmatpush3.bf16.msra.mxu0 %v963_v56 }
  0x35   :  { %896 = vmatpush3.bf16.msra.mxu1 %v964_v57  ;;  %875 = vmatprep.subr.bf16.mxu0 %v965_v58 }
  0x36   :  { %897 = vmatprep.subr.bf16.mxu1 %v966_v59 }
  0x38   :  { %876 = vmatpush3.bf16.msra.mxu0 %v967_v60 }
  0x39   :  { %898 = vmatpush3.bf16.msra.mxu1 %v968_v61  ;;  %877 = vmatprep.subr.bf16.mxu0 %v969_v62 }
  0x3a   :  { %899 = vmatprep.subr.bf16.mxu1 %v970_v63 }
  0x3c   :  { %878 = vmatpush3.bf16.msra.mxu0 %v971_v0 }
  0x3d   :  { %900 = vmatpush3.bf16.msra.mxu1 %v972_v1  ;;  %879 = vmatprep.subr.bf16.mxu0 %v973_v2 }
  0x3e   :  { %901 = vmatprep.subr.bf16.mxu1 %v974_v3 }
  0x40   :  { %880 = vmatpush3.bf16.msra.mxu0 %v975_v4 }
  0x41   :  { %902 = vmatpush3.bf16.msra.mxu1 %v976_v5 }
  0x43   :  { %675 = vmatmul.mubr.bf16.vlgmr.msra.gmra.mrb[4].mxu0 %v751_v7 }
  0x44   :  { %715 = vmatmul.mubr.bf16.vlgmr.msra.gmra.mrb[4].mxu1 %v753_v10 }
  0xf6   :  { %v837_v12 = vpop.f32.mrb[0].mxu0 }
  0xf7   :  { %v859_v13 = vpop.f32.mrb[0].mxu1  ;;  %v838_v14 = vpop.f32.mrb[1].mxu0 }
  0xf8   :  { %v860_v15 = vpop.f32.mrb[1].mxu1  ;;  %v839_v16 = vadd.f32 %v838_v14, %v837_v12  ;;  %v840_v18 = vpop.f32.mrb[2].mxu0 }
  0xf9   :  { %v861_v17 = vadd.f32 %v860_v15, %v859_v13  ;;  %v862_v19 = vpop.f32.mrb[2].mxu1  ;;  %v841_v20 = vpop.f32.mrb[3].mxu0 }
  0xfa   :  { %v863_v21 = vpop.f32.mrb[3].mxu1 }
  0xfb   :  { %v637_v22 = vadd.f32 %v861_v17, %v839_v16 }
 0x116   :  { %v881_v23 = vpop.f32.mrb[4].mxu0 }
 0x117   :  { %v903_v24 = vpop.f32.mrb[4].mxu1  ;;  %v882_v25 = vpop.f32.mrb[5].mxu0 }
 0x118   :  { %v904_v26 = vpop.f32.mrb[5].mxu1  ;;  %v883_v27 = vadd.f32 %v882_v25, %v881_v23  ;;  %v884_v29 = vpop.f32.mrb[6].mxu0 }
 0x119   :  { %v905_v28 = vadd.f32 %v904_v26, %v903_v24  ;;  %v906_v30 = vpop.f32.mrb[6].mxu1  ;;  %v885_v31 = vpop.f32.mrb[7].mxu0 }
 0x11a   :  { %v907_v32 = vpop.f32.mrb[7].mxu1  ;;  %v677_v33 = vadd.f32 %v883_v27, %v637_v22 }
 0x11c   :  { %v717_v35 = vadd.f32 %v905_v28, %v677_v33 }
 0x11e   :  { %v729_v37 = vmul.f32 %v819_v34, %v717_v35 }
 0x120   :  { %v737_v38 = vadd.f32 %v820_v36, %v729_v37 }
 0x122   :  { %vm738_vm0 = vcmp.ge.f32.partialorder %v737_v38, 0.0  ;;  %v739_v39 = vmul.f32 0.2, %v737_v38 }
 0x124   :  { %v740_v40 = vsel %vm738_vm0, %v737_v38, %v739_v39 }
 0x125   :  { %v741_v41 = vpack.c.bf16 %v740_v40, %v740_v40 }
 0x127   :  { %742 = vst [vmem:[%s1223_s4] sm:$0xf] %v741_v41 }

// kernel: fwd.10
= control target key start
LH: loop header
LB: loop body
LE: loop exit
PB: predicated region body
PF: predicated region fallthrough
CT: control target
= control target key end

     0   :  { %s2060_s1 = inlined_call_operand.vmem [shape: bf16[1152,256], index: 1, kind: input, shape index: {}]   ;;  %s2061_s0 = inlined_call_operand.vmem [shape: bf16[8,1152], index: 0, kind: input, shape index: {}]   ;;  %s2062_s2 = inlined_call_operand.vmem [shape: f32[1,256], index: 2, kind: input, shape index: {}]   ;;  %s2063_s3 = inlined_call_operand.vmem [shape: f32[1,256], index: 3, kind: input, shape index: {}]   ;;  %s2064_s4 = inlined_call_operand.vmem [shape: bf16[8,256], index: 4, kind: output, shape index: {}]  }
   0x1   :  { %v1341_v0 = vld [vmem:[%s2060_s1 + $0x4] ss:$8 sps:$4 sm:$0xff]   ;;  %v1345_v2 = vld [vmem:[%s2060_s1] ss:$8 sps:$4 sm:$0xff]   ;;  %v1347_v4 = vld [vmem:[%s2060_s1 + $0x14] ss:$8 sps:$4 sm:$0xff]  }
   0x2   :  { %v1343_v1 = vld [vmem:[%s2060_s1 + $0x204] ss:$8 sps:$4 sm:$0xff]   ;;  %919 = vmatprep.subr.bf16.mxu1 %v1341_v0  ;;  %v1346_v3 = vld [vmem:[%s2060_s1 + $0x200] ss:$8 sps:$4 sm:$0xff]   ;;  %v1349_v5 = vld [vmem:[%s2060_s1 + $0x214] ss:$8 sps:$4 sm:$0xff]  }
   0x3   :  { %1001 = vmatprep.subr.bf16.mxu0 %v1343_v1  ;;  %920 = vmatpush1.bf16.msra.mxu1 %v1345_v2  ;;  %v1351_v6 = vld [vmem:[%s2060_s1 + $0x10] ss:$8 sps:$4 sm:$0xff]   ;;  %v1353_v8 = vld [vmem:[%s2060_s1 + $0x24] ss:$8 sps:$4 sm:$0xff]   ;;  %v1357_v10 = vld [vmem:[%s2060_s1 + $0x20] ss:$8 sps:$4 sm:$0xff]  }
   0x4   :  { %1002 = vmatpush1.bf16.msra.mxu0 %v1346_v3  ;;  %921 = vmatprep.subr.bf16.mxu1 %v1347_v4  ;;  %v1352_v7 = vld [vmem:[%s2060_s1 + $0x210] ss:$8 sps:$4 sm:$0xff]   ;;  %v1355_v9 = vld [vmem:[%s2060_s1 + $0x224] ss:$8 sps:$4 sm:$0xff]   ;;  %v1358_v11 = vld [vmem:[%s2060_s1 + $0x220] ss:$8 sps:$4 sm:$0xff]  }
   0x5   :  { %1003 = vmatprep.subr.bf16.mxu0 %v1349_v5  ;;  %v1359_v12 = vld [vmem:[%s2060_s1 + $0x34] ss:$8 sps:$4 sm:$0xff]   ;;  %v1363_v14 = vld [vmem:[%s2060_s1 + $0x30] ss:$8 sps:$4 sm:$0xff]   ;;  %v1365_v16 = vld [vmem:[%s2060_s1 + $0x44] ss:$8 sps:$4 sm:$0xff]  }
   0x6   :  { %v1361_v13 = vld [vmem:[%s2060_s1 + $0x234] ss:$8 sps:$4 sm:$0xff]   ;;  %v1364_v15 = vld [vmem:[%s2060_s1 + $0x230] ss:$8 sps:$4 sm:$0xff]   ;;  %v1367_v17 = vld [vmem:[%s2060_s1 + $0x244] ss:$8 sps:$4 sm:$0xff]  }
   0x7   :  { %922 = vmatpush1.bf16.msra.mxu1 %v1351_v6  ;;  %v1369_v18 = vld [vmem:[%s2060_s1 + $0x40] ss:$8 sps:$4 sm:$0xff]   ;;  %v1371_v20 = vld [vmem:[%s2060_s1 + $0x54] ss:$8 sps:$4 sm:$0xff]   ;;  %v1375_v22 = vld [vmem:[%s2060_s1 + $0x50] ss:$8 sps:$4 sm:$0xff]  }
   0x8   :  { %1004 = vmatpush1.bf16.msra.mxu0 %v1352_v7  ;;  %923 = vmatprep.subr.bf16.mxu1 %v1353_v8  ;;  %v1370_v19 = vld [vmem:[%s2060_s1 + $0x240] ss:$8 sps:$4 sm:$0xff]   ;;  %v1373_v21 = vld [vmem:[%s2060_s1 + $0x254] ss:$8 sps:$4 sm:$0xff]   ;;  %v1376_v23 = vld [vmem:[%s2060_s1 + $0x250] ss:$8 sps:$4 sm:$0xff]  }
   0x9   :  { %1005 = vmatprep.subr.bf16.mxu0 %v1355_v9  ;;  %v1377_v24 = vld [vmem:[%s2060_s1 + $0x64] ss:$8 sps:$4 sm:$0xff]   ;;  %v1381_v26 = vld [vmem:[%s2060_s1 + $0x60] ss:$8 sps:$4 sm:$0xff]   ;;  %v1383_v28 = vld [vmem:[%s2060_s1 + $0x74] ss:$8 sps:$4 sm:$0xff]  }
   0xa   :  { %v1379_v25 = vld [vmem:[%s2060_s1 + $0x264] ss:$8 sps:$4 sm:$0xff]   ;;  %v1382_v27 = vld [vmem:[%s2060_s1 + $0x260] ss:$8 sps:$4 sm:$0xff]   ;;  %v1385_v29 = vld [vmem:[%s2060_s1 + $0x274] ss:$8 sps:$4 sm:$0xff]  }
   0xb   :  { %924 = vmatpush1.bf16.msra.mxu1 %v1357_v10  ;;  %v1387_v30 = vld [vmem:[%s2060_s1 + $0x70] ss:$8 sps:$4 sm:$0xff]   ;;  %v1389_v32 = vld [vmem:[%s2060_s1 + $0x84] ss:$8 sps:$4 sm:$0xff]   ;;  %v1393_v34 = vld [vmem:[%s2060_s1 + $0x80] ss:$8 sps:$4 sm:$0xff]  }
   0xc   :  { %1006 = vmatpush1.bf16.msra.mxu0 %v1358_v11  ;;  %925 = vmatprep.subr.bf16.mxu1 %v1359_v12  ;;  %v1388_v31 = vld [vmem:[%s2060_s1 + $0x270] ss:$8 sps:$4 sm:$0xff]   ;;  %v1391_v33 = vld [vmem:[%s2060_s1 + $0x284] ss:$8 sps:$4 sm:$0xff]   ;;  %v1394_v35 = vld [vmem:[%s2060_s1 + $0x280] ss:$8 sps:$4 sm:$0xff]  }
   0xd   :  { %1007 = vmatprep.subr.bf16.mxu0 %v1361_v13  ;;  %v1395_v36 = vld [vmem:[%s2060_s1 + $0x94] ss:$8 sps:$4 sm:$0xff]   ;;  %v1399_v38 = vld [vmem:[%s2060_s1 + $0x90] ss:$8 sps:$4 sm:$0xff]   ;;  %v1401_v40 = vld [vmem:[%s2060_s1 + $0xa4] ss:$8 sps:$4 sm:$0xff]  }
   0xe   :  { %v1397_v37 = vld [vmem:[%s2060_s1 + $0x294] ss:$8 sps:$4 sm:$0xff]   ;;  %v1400_v39 = vld [vmem:[%s2060_s1 + $0x290] ss:$8 sps:$4 sm:$0xff]   ;;  %v1403_v41 = vld [vmem:[%s2060_s1 + $0x2a4] ss:$8 sps:$4 sm:$0xff]  }
   0xf   :  { %926 = vmatpush1.bf16.msra.mxu1 %v1363_v14  ;;  %v1405_v42 = vld [vmem:[%s2060_s1 + $0xa0] ss:$8 sps:$4 sm:$0xff]   ;;  %v1407_v44 = vld [vmem:[%s2060_s1 + $0xb4] ss:$8 sps:$4 sm:$0xff]   ;;  %v1411_v47 = vld [vmem:[%s2060_s1 + $0xb0] ss:$8 sps:$4 sm:$0xff]  }
  0x10   :  { %1008 = vmatpush1.bf16.msra.mxu0 %v1364_v15  ;;  %927 = vmatprep.subr.bf16.mxu1 %v1365_v16  ;;  %v1406_v43 = vld [vmem:[%s2060_s1 + $0x2a0] ss:$8 sps:$4 sm:$0xff]   ;;  %v1409_v45 = vld [vmem:[%s2060_s1 + $0x2b4] ss:$8 sps:$4 sm:$0xff]   ;;  %v1412_v49 = vld [vmem:[%s2060_s1 + $0x2b0] ss:$8 sps:$4 sm:$0xff]  }
  0x11   :  { %1009 = vmatprep.subr.bf16.mxu0 %v1367_v17  ;;  %v18_v46 = vld [vmem:[%s2061_s0] sm:$0xff]  ;;  %v20_v50 = vld [vmem:[%s2061_s0 + $0x10] sm:$0xff] }
  0x12   :  { %v1172_v48 = vcombine.high %v18_v46, %v18_v46  ;;  %v1413_v51 = vld [vmem:[%s2060_s1 + $0xc4] ss:$8 sps:$4 sm:$0xff]   ;;  %v1176_v53 = vcombine.high %v20_v50, %v20_v50  ;;  %v1417_v54 = vld [vmem:[%s2060_s1 + $0xc0] ss:$8 sps:$4 sm:$0xff]   ;;  %v1419_v56 = vld [vmem:[%s2060_s1 + $0xd4] ss:$8 sps:$4 sm:$0xff]   ;;  %v1171_v6 = vcombine.low %v18_v46, %v18_v46  ;;  %v1175_v7 = vcombine.low %v20_v50, %v20_v50 }
  0x13   :  { %928 = vmatpush1.bf16.msra.mxu1 %v1369_v18  ;;  %v1415_v52 = vld [vmem:[%s2060_s1 + $0x2c4] ss:$8 sps:$4 sm:$0xff]   ;;  %v1418_v55 = vld [vmem:[%s2060_s1 + $0x2c0] ss:$8 sps:$4 sm:$0xff]   ;;  %v1421_v57 = vld [vmem:[%s2060_s1 + $0x2d4] ss:$8 sps:$4 sm:$0xff]  }
  0x14   :  { %1010 = vmatpush1.bf16.msra.mxu0 %v1370_v19  ;;  %929 = vmatprep.subr.bf16.mxu1 %v1371_v20  ;;  %v1423_v58 = vld [vmem:[%s2060_s1 + $0xd0] ss:$8 sps:$4 sm:$0xff]   ;;  %v1425_v60 = vld [vmem:[%s2060_s1 + $0xe4] ss:$8 sps:$4 sm:$0xff]   ;;  %v1429_v62 = vld [vmem:[%s2060_s1 + $0xe0] ss:$8 sps:$4 sm:$0xff]  }
  0x15   :  { %1011 = vmatprep.subr.bf16.mxu0 %v1373_v21  ;;  %951 = vmatprep.mubr.bf16.mxu1 %v1172_v48  ;;  %v1424_v59 = vld [vmem:[%s2060_s1 + $0x2d0] ss:$8 sps:$4 sm:$0xff]   ;;  %v1427_v61 = vld [vmem:[%s2060_s1 + $0x2e4] ss:$8 sps:$4 sm:$0xff]   ;;  %v1430_v63 = vld [vmem:[%s2060_s1 + $0x2e0] ss:$8 sps:$4 sm:$0xff]  }
  0x16   :  { %1033 = vmatprep.mubr.bf16.mxu0 %v1176_v53  ;;  %v1431_v0 = vld [vmem:[%s2060_s1 + $0xf4] ss:$8 sps:$4 sm:$0xff]   ;;  %v1435_v2 = vld [vmem:[%s2060_s1 + $0xf0] ss:$8 sps:$4 sm:$0xff]   ;;  %v1441_v4 = vld [vmem:[%s2060_s1 + $0x104] ss:$8 sps:$4 sm:$0xff]  }
  0x17   :  { %930 = vmatpush1.bf16.msra.mxu1 %v1375_v22  ;;  %v1433_v1 = vld [vmem:[%s2060_s1 + $0x2f4] ss:$8 sps:$4 sm:$0xff]   ;;  %v1436_v3 = vld [vmem:[%s2060_s1 + $0x2f0] ss:$8 sps:$4 sm:$0xff]   ;;  %v1446_v5 = vld [vmem:[%s2060_s1 + $0x304] ss:$8 sps:$4 sm:$0xff]  }
  0x18   :  { %1012 = vmatpush1.bf16.msra.mxu0 %v1376_v23  ;;  %931 = vmatprep.subr.bf16.mxu1 %v1377_v24  ;;  %v1439_v8 = vld [vmem:[%s2060_s1 + $0x100] ss:$8 sps:$4 sm:$0xff]   ;;  %v1449_v10 = vld [vmem:[%s2060_s1 + $0x114] ss:$8 sps:$4 sm:$0xff]   ;;  %v1447_v12 = vld [vmem:[%s2060_s1 + $0x110] ss:$8 sps:$4 sm:$0xff]  }
  0x19   :  { %1013 = vmatprep.subr.bf16.mxu0 %v1379_v25  ;;  %v1444_v9 = vld [vmem:[%s2060_s1 + $0x300] ss:$8 sps:$4 sm:$0xff]   ;;  %v1452_v11 = vld [vmem:[%s2060_s1 + $0x314] ss:$8 sps:$4 sm:$0xff]   ;;  %v1450_v13 = vld [vmem:[%s2060_s1 + $0x310] ss:$8 sps:$4 sm:$0xff]  }
  0x1a   :  { %v1455_v14 = vld [vmem:[%s2060_s1 + $0x124] ss:$8 sps:$4 sm:$0xff]   ;;  %v1453_v16 = vld [vmem:[%s2060_s1 + $0x120] ss:$8 sps:$4 sm:$0xff]   ;;  %v1461_v18 = vld [vmem:[%s2060_s1 + $0x134] ss:$8 sps:$4 sm:$0xff]  }
  0x1b   :  { %932 = vmatpush1.bf16.msra.mxu1 %v1381_v26  ;;  %v1458_v15 = vld [vmem:[%s2060_s1 + $0x324] ss:$8 sps:$4 sm:$0xff]   ;;  %v1456_v17 = vld [vmem:[%s2060_s1 + $0x320] ss:$8 sps:$4 sm:$0xff]   ;;  %v1464_v19 = vld [vmem:[%s2060_s1 + $0x334] ss:$8 sps:$4 sm:$0xff]  }
  0x1c   :  { %1014 = vmatpush1.bf16.msra.mxu0 %v1382_v27  ;;  %933 = vmatprep.subr.bf16.mxu1 %v1383_v28  ;;  %v1459_v20 = vld [vmem:[%s2060_s1 + $0x130] ss:$8 sps:$4 sm:$0xff]   ;;  %v1467_v22 = vld [vmem:[%s2060_s1 + $0x144] ss:$8 sps:$4 sm:$0xff]   ;;  %v1465_v24 = vld [vmem:[%s2060_s1 + $0x140] ss:$8 sps:$4 sm:$0xff]  }
  0x1d   :  { %1015 = vmatprep.subr.bf16.mxu0 %v1385_v29  ;;  %v1462_v21 = vld [vmem:[%s2060_s1 + $0x330] ss:$8 sps:$4 sm:$0xff]   ;;  %v1470_v23 = vld [vmem:[%s2060_s1 + $0x344] ss:$8 sps:$4 sm:$0xff]   ;;  %v1468_v25 = vld [vmem:[%s2060_s1 + $0x340] ss:$8 sps:$4 sm:$0xff]  }
  0x1e   :  { %v1473_v26 = vld [vmem:[%s2060_s1 + $0x154] ss:$8 sps:$4 sm:$0xff]   ;;  %v1471_v28 = vld [vmem:[%s2060_s1 + $0x150] ss:$8 sps:$4 sm:$0xff]   ;;  %v1503_v50 = vld [vmem:[%s2060_s1 + $0x1a4] ss:$8 sps:$4 sm:$0xff]  }
  0x1f   :  { %934 = vmatpush1.bf16.msra.mxu1 %v1387_v30  ;;  %v1476_v27 = vld [vmem:[%s2060_s1 + $0x354] ss:$8 sps:$4 sm:$0xff]   ;;  %v1474_v29 = vld [vmem:[%s2060_s1 + $0x350] ss:$8 sps:$4 sm:$0xff]   ;;  %v1479_v30 = vld [vmem:[%s2060_s1 + $0x164] ss:$8 sps:$4 sm:$0xff]  }
  0x20   :  { %1016 = vmatpush1.bf16.msra.mxu0 %v1388_v31  ;;  %935 = vmatprep.subr.bf16.mxu1 %v1389_v32  ;;  %v1482_v31 = vld [vmem:[%s2060_s1 + $0x364] ss:$8 sps:$4 sm:$0xff]   ;;  %v1497_v46 = vld [vmem:[%s2060_s1 + $0x194] ss:$8 sps:$4 sm:$0xff]   ;;  %v1495_v48 = vld [vmem:[%s2060_s1 + $0x190] ss:$8 sps:$4 sm:$0xff]  }
  0x21   :  { %1017 = vmatprep.subr.bf16.mxu0 %v1391_v33  ;;  %v1871_v32 = vld [vmem:[%s2061_s0 + $0x8] sm:$0xff]  ;;  %v1876_v33 = vld [vmem:[%s2061_s0 + $0x18] sm:$0xff] }
  0x22   :  { %v1504_v53 = vld [vmem:[%s2060_s1 + $0x3a0] ss:$8 sps:$4 sm:$0xff]  }
  0x23   :  { %936 = vmatpush1.bf16.msra.mxu1 %v1393_v34  ;;  %v1477_v34 = vld [vmem:[%s2060_s1 + $0x160] ss:$8 sps:$4 sm:$0xff]  }
  0x24   :  { %1018 = vmatpush1.bf16.msra.mxu0 %v1394_v35  ;;  %937 = vmatprep.subr.bf16.mxu1 %v1395_v36  ;;  %v1480_v35 = vld [vmem:[%s2060_s1 + $0x360] ss:$8 sps:$4 sm:$0xff]   ;;  %v1174_v36 = vcombine.high %v1871_v32, %v1871_v32 }
  0x25   :  { %1019 = vmatprep.subr.bf16.mxu0 %v1397_v37  ;;  %v1178_v37 = vcombine.high %v1876_v33, %v1876_v33 }
  0x27   :  { %938 = vmatpush1.bf16.msra.mxu1 %v1399_v38  ;;  %v1485_v38 = vld [vmem:[%s2060_s1 + $0x174] ss:$8 sps:$4 sm:$0xff]  }
  0x28   :  { %1020 = vmatpush1.bf16.msra.mxu0 %v1400_v39  ;;  %939 = vmatprep.subr.bf16.mxu1 %v1401_v40  ;;  %v1488_v39 = vld [vmem:[%s2060_s1 + $0x374] ss:$8 sps:$4 sm:$0xff]   ;;  %v1483_v40 = vld [vmem:[%s2060_s1 + $0x170] ss:$8 sps:$4 sm:$0xff]  }
  0x29   :  { %1021 = vmatprep.subr.bf16.mxu0 %v1403_v41  ;;  %v1486_v41 = vld [vmem:[%s2060_s1 + $0x370] ss:$8 sps:$4 sm:$0xff]  }
  0x2b   :  { %940 = vmatpush1.bf16.msra.mxu1 %v1405_v42  ;;  %v1491_v42 = vld [vmem:[%s2060_s1 + $0x184] ss:$8 sps:$4 sm:$0xff]  }
  0x2c   :  { %1022 = vmatpush1.bf16.msra.mxu0 %v1406_v43  ;;  %941 = vmatprep.subr.bf16.mxu1 %v1407_v44  ;;  %v1494_v43 = vld [vmem:[%s2060_s1 + $0x384] ss:$8 sps:$4 sm:$0xff]   ;;  %v1489_v44 = vld [vmem:[%s2060_s1 + $0x180] ss:$8 sps:$4 sm:$0xff]  }
  0x2d   :  { %1023 = vmatprep.subr.bf16.mxu0 %v1409_v45  ;;  %v1492_v45 = vld [vmem:[%s2060_s1 + $0x380] ss:$8 sps:$4 sm:$0xff]  }
  0x2f   :  { %942 = vmatpush1.bf16.msra.mxu1 %v1411_v47  ;;  %v1500_v47 = vld [vmem:[%s2060_s1 + $0x394] ss:$8 sps:$4 sm:$0xff]  }
  0x30   :  { %1024 = vmatpush1.bf16.msra.mxu0 %v1412_v49  ;;  %943 = vmatprep.subr.bf16.mxu1 %v1413_v51  ;;  %v1498_v49 = vld [vmem:[%s2060_s1 + $0x390] ss:$8 sps:$4 sm:$0xff]   ;;  %v1506_v51 = vld [vmem:[%s2060_s1 + $0x3a4] ss:$8 sps:$4 sm:$0xff]  }
  0x31   :  { %1025 = vmatprep.subr.bf16.mxu0 %v1415_v52  ;;  %v1501_v52 = vld [vmem:[%s2060_s1 + $0x1a0] ss:$8 sps:$4 sm:$0xff]  }
  0x33   :  { %944 = vmatpush1.bf16.msra.mxu1 %v1417_v54  ;;  %v1509_v54 = vld [vmem:[%s2060_s1 + $0x1b4] ss:$8 sps:$4 sm:$0xff]  }
  0x34   :  { %1026 = vmatpush1.bf16.msra.mxu0 %v1418_v55  ;;  %945 = vmatprep.subr.bf16.mxu1 %v1419_v56  ;;  %v1512_v55 = vld [vmem:[%s2060_s1 + $0x3b4] ss:$8 sps:$4 sm:$0xff]   ;;  %v1507_v56 = vld [vmem:[%s2060_s1 + $0x1b0] ss:$8 sps:$4 sm:$0xff]  }
  0x35   :  { %1027 = vmatprep.subr.bf16.mxu0 %v1421_v57  ;;  %v1510_v57 = vld [vmem:[%s2060_s1 + $0x3b0] ss:$8 sps:$4 sm:$0xff]  }
  0x37   :  { %946 = vmatpush1.bf16.msra.mxu1 %v1423_v58  ;;  %v1515_v58 = vld [vmem:[%s2060_s1 + $0x1c4] ss:$8 sps:$4 sm:$0xff]  }
  0x38   :  { %1028 = vmatpush1.bf16.msra.mxu0 %v1424_v59  ;;  %947 = vmatprep.subr.bf16.mxu1 %v1425_v60  ;;  %v1518_v59 = vld [vmem:[%s2060_s1 + $0x3c4] ss:$8 sps:$4 sm:$0xff]   ;;  %v1513_v60 = vld [vmem:[%s2060_s1 + $0x1c0] ss:$8 sps:$4 sm:$0xff]  }
  0x39   :  { %1029 = vmatprep.subr.bf16.mxu0 %v1427_v61  ;;  %v1516_v61 = vld [vmem:[%s2060_s1 + $0x3c0] ss:$8 sps:$4 sm:$0xff]  }
  0x3b   :  { %948 = vmatpush1.bf16.msra.mxu1 %v1429_v62  ;;  %v1521_v62 = vld [vmem:[%s2060_s1 + $0x1d4] ss:$8 sps:$4 sm:$0xff]  }
  0x3c   :  { %1030 = vmatpush1.bf16.msra.mxu0 %v1430_v63  ;;  %949 = vmatprep.subr.bf16.mxu1 %v1431_v0  ;;  %v1524_v63 = vld [vmem:[%s2060_s1 + $0x3d4] ss:$8 sps:$4 sm:$0xff]   ;;  %v1519_v0 = vld [vmem:[%s2060_s1 + $0x1d0] ss:$8 sps:$4 sm:$0xff]  }
  0x3d   :  { %1031 = vmatprep.subr.bf16.mxu0 %v1433_v1  ;;  %v1522_v1 = vld [vmem:[%s2060_s1 + $0x3d0] ss:$8 sps:$4 sm:$0xff]  }
  0x3f   :  { %950 = vmatpush1.bf16.msra.mxu1 %v1435_v2  ;;  %v1527_v2 = vld [vmem:[%s2060_s1 + $0x1e4] ss:$8 sps:$4 sm:$0xff]  }
  0x40   :  { %1032 = vmatpush1.bf16.msra.mxu0 %v1436_v3  ;;  %960 = vmatprep.subr.bf16.mxu1 %v1441_v4  ;;  %v1530_v3 = vld [vmem:[%s2060_s1 + $0x3e4] ss:$8 sps:$4 sm:$0xff]   ;;  %v1525_v4 = vld [vmem:[%s2060_s1 + $0x1e0] ss:$8 sps:$4 sm:$0xff]  }
  0x41   :  { %1042 = vmatprep.subr.bf16.mxu0 %v1446_v5  ;;  %v1528_v5 = vld [vmem:[%s2060_s1 + $0x3e0] ss:$8 sps:$4 sm:$0xff]  }
  0x42   :  { %952 = vmatmul.mubr.bf16.vlgmr.msra.gmra.mrb[0].mxu1 %v1171_v6  ;;  %v1533_v6 = vld [vmem:[%s2060_s1 + $0x1f4] ss:$8 sps:$4 sm:$0xff]  }
  0x43   :  { %1034 = vmatmul.mubr.bf16.vlgmr.msra.gmra.mrb[0].mxu0 %v1175_v7  ;;  %961 = vmatpush1.bf16.msra.mxu1 %v1439_v8  ;;  %v1536_v7 = vld [vmem:[%s2060_s1 + $0x3f4] ss:$8 sps:$4 sm:$0xff]   ;;  %v1531_v8 = vld [vmem:[%s2060_s1 + $0x1f0] ss:$8 sps:$4 sm:$0xff]  }
  0x44   :  { %1043 = vmatpush1.bf16.msra.mxu0 %v1444_v9  ;;  %962 = vmatprep.subr.bf16.mxu1 %v1449_v10  ;;  %v1534_v9 = vld [vmem:[%s2060_s1 + $0x3f0] ss:$8 sps:$4 sm:$0xff]   ;;  %v1543_v10 = vld [vmem:[%s2060_s1 + $0x404] ss:$8 sps:$4 sm:$0xff]  }
  0x45   :  { %1044 = vmatprep.subr.bf16.mxu0 %v1452_v11  ;;  %992 = vmatprep.mubr.bf16.mxu1 %v1174_v36  ;;  %v1173_v11 = vcombine.low %v1871_v32, %v1871_v32 }
  0x46   :  { %1074 = vmatprep.mubr.bf16.mxu0 %v1178_v37  ;;  %v1124_v37 = vld [vmem:[%s2062_s2] sm:$0x3] }
  0x47   :  { %963 = vmatpush1.bf16.msra.mxu1 %v1447_v12  ;;  %v1177_v12 = vcombine.low %v1876_v33, %v1876_v33 }
  0x48   :  { %1045 = vmatpush1.bf16.msra.mxu0 %v1450_v13  ;;  %964 = vmatprep.subr.bf16.mxu1 %v1455_v14  ;;  %v1541_v13 = vld [vmem:[%s2060_s1 + $0x400] ss:$8 sps:$4 sm:$0xff]   ;;  %v1546_v14 = vld [vmem:[%s2060_s1 + $0x414] ss:$8 sps:$4 sm:$0xff]  }
  0x49   :  { %1046 = vmatprep.subr.bf16.mxu0 %v1458_v15  ;;  %v1544_v15 = vld [vmem:[%s2060_s1 + $0x410] ss:$8 sps:$4 sm:$0xff]  }
  0x4b   :  { %965 = vmatpush1.bf16.msra.mxu1 %v1453_v16  ;;  %v1566_v16 = vmov 0  }
  0x4c   :  { %1047 = vmatpush1.bf16.msra.mxu0 %v1456_v17  ;;  %966 = vmatprep.subr.bf16.mxu1 %v1461_v18  ;;  %v1549_v17 = vld [vmem:[%s2060_s1 + $0x424] ss:$8 sps:$4 sm:$0xff]   ;;  %v1547_v18 = vld [vmem:[%s2060_s1 + $0x420] ss:$8 sps:$4 sm:$0xff]  }
  0x4d   :  { %1048 = vmatprep.subr.bf16.mxu0 %v1464_v19  ;;  %v1552_v19 = vld [vmem:[%s2060_s1 + $0x434] ss:$8 sps:$4 sm:$0xff]  }
  0x4f   :  { %967 = vmatpush1.bf16.msra.mxu1 %v1459_v20  ;;  %v1550_v20 = vld [vmem:[%s2060_s1 + $0x430] ss:$8 sps:$4 sm:$0xff]  }
  0x50   :  { %1049 = vmatpush1.bf16.msra.mxu0 %v1462_v21  ;;  %968 = vmatprep.subr.bf16.mxu1 %v1467_v22  ;;  %v1555_v21 = vld [vmem:[%s2060_s1 + $0x444] ss:$8 sps:$4 sm:$0xff]   ;;  %v1553_v22 = vld [vmem:[%s2060_s1 + $0x440] ss:$8 sps:$4 sm:$0xff]  }
  0x51   :  { %1050 = vmatprep.subr.bf16.mxu0 %v1470_v23  ;;  %v1558_v23 = vld [vmem:[%s2060_s1 + $0x454] ss:$8 sps:$4 sm:$0xff]  }
  0x53   :  { %969 = vmatpush1.bf16.msra.mxu1 %v1465_v24  ;;  %v1556_v24 = vld [vmem:[%s2060_s1 + $0x450] ss:$8 sps:$4 sm:$0xff]  }
  0x54   :  { %1051 = vmatpush1.bf16.msra.mxu0 %v1468_v25  ;;  %970 = vmatprep.subr.bf16.mxu1 %v1473_v26  ;;  %v1561_v25 = vld [vmem:[%s2060_s1 + $0x464] ss:$8 sps:$4 sm:$0xff]   ;;  %v1559_v26 = vld [vmem:[%s2060_s1 + $0x460] ss:$8 sps:$4 sm:$0xff]  }
  0x55   :  { %1052 = vmatprep.subr.bf16.mxu0 %v1476_v27  ;;  %v1564_v27 = vld [vmem:[%s2060_s1 + $0x474] ss:$8 sps:$4 sm:$0xff]  }
  0x57   :  { %971 = vmatpush1.bf16.msra.mxu1 %v1471_v28  ;;  %v1562_v28 = vld [vmem:[%s2060_s1 + $0x470] ss:$8 sps:$4 sm:$0xff]  }
  0x58   :  { %1053 = vmatpush1.bf16.msra.mxu0 %v1474_v29  ;;  %972 = vmatprep.subr.bf16.mxu1 %v1479_v30  ;;  %v1565_v29 = vld [vmem:[%s2061_s0 + $0x20] ss:$0 sps:$4 sm:$0xff]  }
  0x59   :  { %1054 = vmatprep.subr.bf16.mxu0 %v1482_v31 }
  0x5b   :  { %973 = vmatpush1.bf16.msra.mxu1 %v1477_v34  ;;  %v1126_v34 = vlaneseq }
  0x5c   :  { %1055 = vmatpush1.bf16.msra.mxu0 %v1480_v35  ;;  %974 = vmatprep.subr.bf16.mxu1 %v1485_v38 }
  0x5d   :  { %1056 = vmatprep.subr.bf16.mxu0 %v1488_v39  ;;  %v1127_v35 = vshrl.u32 %v1126_v34, 7  ;;  %v1138_v39 = vld [vmem:[%s2063_s3] sm:$0x3] }
  0x5f   :  { %975 = vmatpush1.bf16.msra.mxu1 %v1483_v40  ;;  %v1128_v36 = vsub.s32 0, %v1127_v35  ;;  %v1132_v38 = vsub.s32 1, %v1127_v35 }
  0x60   :  { %1057 = vmatpush1.bf16.msra.mxu0 %v1486_v41  ;;  %976 = vmatprep.subr.bf16.mxu1 %v1491_v42 }
  0x61   :  { %1058 = vmatprep.subr.bf16.mxu0 %v1494_v43  ;;  %v1129_v40 = vrot.slane %v1124_v37, %v1128_v36  ;;  %v1133_v42 = vrot.slane %v1124_v37, %v1132_v38 }
  0x63   :  { %977 = vmatpush1.bf16.msra.mxu1 %v1489_v44  ;;  %v1143_v44 = vrot.slane %v1138_v39, %v1128_v36 }
  0x64   :  { %1059 = vmatpush1.bf16.msra.mxu0 %v1492_v45  ;;  %978 = vmatprep.subr.bf16.mxu1 %v1497_v46 }
  0x65   :  { %1060 = vmatprep.subr.bf16.mxu0 %v1500_v47  ;;  %v1147_v47 = vrot.slane %v1138_v39, %v1132_v38 }
  0x67   :  { %979 = vmatpush1.bf16.msra.mxu1 %v1495_v48 }
  0x68   :  { %1061 = vmatpush1.bf16.msra.mxu0 %v1498_v49  ;;  %980 = vmatprep.subr.bf16.mxu1 %v1503_v50 }
  0x69   :  { %1062 = vmatprep.subr.bf16.mxu0 %v1506_v51 }
  0x6b   :  { %981 = vmatpush1.bf16.msra.mxu1 %v1501_v52 }
  0x6c   :  { %1063 = vmatpush1.bf16.msra.mxu0 %v1504_v53  ;;  %982 = vmatprep.subr.bf16.mxu1 %v1509_v54 }
  0x6d   :  { %1064 = vmatprep.subr.bf16.mxu0 %v1512_v55 }
  0x6f   :  { %983 = vmatpush1.bf16.msra.mxu1 %v1507_v56 }
  0x70   :  { %1065 = vmatpush1.bf16.msra.mxu0 %v1510_v57  ;;  %984 = vmatprep.subr.bf16.mxu1 %v1515_v58 }
  0x71   :  { %1066 = vmatprep.subr.bf16.mxu0 %v1518_v59 }
  0x73   :  { %985 = vmatpush1.bf16.msra.mxu1 %v1513_v60 }
  0x74   :  { %1067 = vmatpush1.bf16.msra.mxu0 %v1516_v61  ;;  %986 = vmatprep.subr.bf16.mxu1 %v1521_v62 }
  0x75   :  { %1068 = vmatprep.subr.bf16.mxu0 %v1524_v63 }
  0x77   :  { %987 = vmatpush1.bf16.msra.mxu1 %v1519_v0 }
  0x78   :  { %1069 = vmatpush1.bf16.msra.mxu0 %v1522_v1  ;;  %988 = vmatprep.subr.bf16.mxu1 %v1527_v2 }
  0x79   :  { %1070 = vmatprep.subr.bf16.mxu0 %v1530_v3 }
  0x7b   :  { %989 = vmatpush1.bf16.msra.mxu1 %v1525_v4 }
  0x7c   :  { %1071 = vmatpush1.bf16.msra.mxu0 %v1528_v5  ;;  %990 = vmatprep.subr.bf16.mxu1 %v1533_v6 }
  0x7d   :  { %1072 = vmatprep.subr.bf16.mxu0 %v1536_v7 }
  0x7f   :  { %991 = vmatpush1.bf16.msra.mxu1 %v1531_v8 }
  0x80   :  { %1073 = vmatpush1.bf16.msra.mxu0 %v1534_v9 }
  0x81   :  { %1083 = vmatprep.subr.bf16.mxu0 %v1543_v10 }
  0x82   :  { %993 = vmatmul.mubr.bf16.vlgmr.msra.gmra.mrb[0].mxu1 %v1173_v11 }
  0x83   :  { %1075 = vmatmul.mubr.bf16.vlgmr.msra.gmra.mrb[0].mxu0 %v1177_v12 }
  0x84   :  { %1084 = vmatpush1.bf16.msra.mxu0 %v1541_v13  ;;  %1115 = vmatprep.mubr.bf16.mxu0 %v1566_v16 }
  0x85   :  { %1085 = vmatprep.subr.bf16.mxu0 %v1546_v14 }
  0x88   :  { %1086 = vmatpush1.bf16.msra.mxu0 %v1544_v15 }
  0x89   :  { %1087 = vmatprep.subr.bf16.mxu0 %v1549_v17 }
  0x8c   :  { %1088 = vmatpush1.bf16.msra.mxu0 %v1547_v18 }
  0x8d   :  { %1089 = vmatprep.subr.bf16.mxu0 %v1552_v19 }
  0x90   :  { %1090 = vmatpush1.bf16.msra.mxu0 %v1550_v20 }
  0x91   :  { %1091 = vmatprep.subr.bf16.mxu0 %v1555_v21 }
  0x94   :  { %1092 = vmatpush1.bf16.msra.mxu0 %v1553_v22 }
  0x95   :  { %1093 = vmatprep.subr.bf16.mxu0 %v1558_v23 }
  0x98   :  { %1094 = vmatpush1.bf16.msra.mxu0 %v1556_v24 }
  0x99   :  { %1095 = vmatprep.subr.bf16.mxu0 %v1561_v25 }
  0x9c   :  { %1096 = vmatpush1.bf16.msra.mxu0 %v1559_v26 }
  0x9d   :  { %1097 = vmatprep.subr.bf16.mxu0 %v1564_v27 }
  0xa0   :  { %1098 = vmatpush1.bf16.msra.mxu0 %v1562_v28 }
  0xa3   :  { %1116 = vmatmul.mubr.bf16.vlgmr.msra.gmra.mrb[0].mxu0 %v1565_v29 }
 0x155   :  { %v994_v30 = vpop.f32.mrb[0].mxu1 }
 0x156   :  { %v996_v31 = vpop.f32.mrb[1].mxu1 }
 0x157   :  { %v998_v32 = vpop.f32.mrb[2].mxu1 }
 0x158   :  { %v999_v33 = vpop.f32.mrb[3].mxu1 }
 0x176   :  { %v1117_v41 = vpop.f32.mrb[0].mxu0 }
 0x177   :  { %v1326_v43 = vadd.f32 %v1117_v41, %v994_v30  ;;  %v1119_v45 = vpop.f32.mrb[1].mxu0 }
 0x178   :  { %v1327_v46 = vadd.f32 %v1119_v45, %v996_v31  ;;  %v1121_v48 = vpop.f32.mrb[2].mxu0 }
 0x179   :  { %v1136_v49 = vmul.f32 %v1326_v43, %v1129_v40  ;;  %v1122_v50 = vpop.f32.mrb[3].mxu0 }
 0x17a   :  { %v1137_v51 = vmul.f32 %v1327_v46, %v1133_v42 }
 0x17b   :  { %v1150_v52 = vadd.f32 %v1143_v44, %v1136_v49 }
 0x17c   :  { %v1151_v53 = vadd.f32 %v1147_v47, %v1137_v51 }
 0x17d   :  { %vm1152_vm0 = vcmp.ge.f32.partialorder %v1150_v52, 0.0  ;;  %v1154_v54 = vmul.f32 0.2, %v1150_v52 }
 0x17e   :  { %vm1153_vm1 = vcmp.ge.f32.partialorder %v1151_v53, 0.0  ;;  %v1155_v55 = vmul.f32 0.2, %v1151_v53 }
 0x17f   :  { %v1156_v56 = vsel %vm1152_vm0, %v1150_v52, %v1154_v54 }
 0x180   :  { %v1157_v57 = vsel %vm1153_vm1, %v1151_v53, %v1155_v55 }
 0x181   :  { %v1325_v58 = vpack.c.bf16 %v1157_v57, %v1156_v56 }
 0x183   :  { %1166 = vst [vmem:[%s2064_s4] sm:$0xff] %v1325_v58 }

// kernel: fwd.11
= control target key start
LH: loop header
LB: loop body
LE: loop exit
PB: predicated region body
PF: predicated region fallthrough
CT: control target
= control target key end

     0   :  { %vm598_vm0 = vcmask 1041408   ;;  %vm1383_vm1 = vmmov 0   ;;  %vm594_vm2 = vcmask 162816   ;;  %s1718_s1 = inlined_call_operand.vmem [shape: bf16[1044,128], index: 1, kind: input, shape index: {}]   ;;  %s1719_s0 = inlined_call_operand.vmem [shape: bf16[8,1044], index: 0, kind: input, shape index: {}]   ;;  %s1720_s3 = inlined_call_operand.vmem [shape: bf16[128,128], index: 3, kind: input, shape index: {}]   ;;  %s1721_s5 = inlined_call_operand.vmem [shape: bf16[128,128], index: 5, kind: input, shape index: {}]   ;;  %s1722_s2 = inlined_call_operand.vmem [shape: f32[1,128], index: 2, kind: input, shape index: {}]   ;;  %s1723_s4 = inlined_call_operand.vmem [shape: f32[1,128], index: 4, kind: input, shape index: {}]   ;;  %s1724_s6 = inlined_call_operand.vmem [shape: f32[1,128], index: 6, kind: input, shape index: {}]   ;;  %s1725_s7 = inlined_call_operand.vmem [shape: f32[8,128], index: 7, kind: output, shape index: {}]  }
   0x1   :  { %v1291_v0 = vld [vmem:[%s1718_s1 + $0x40] sm:$0xff]   ;;  %v1295_v4 = vld [vmem:[%s1718_s1 + $0x48] sm:$0xff]   ;;  %v1299_v8 = vld [vmem:[%s1718_s1 + $0x50] sm:$0xff]  }
   0x2   :  { %v1292_v1 = vld [vmem:[%s1718_s1] sm:$0xff]   ;;  %1132 = vmatprep.subr.bf16.mxu0 %v1291_v0  ;;  %v1296_v5 = vld [vmem:[%s1718_s1 + $0x8] sm:$0xff]   ;;  %v1300_v9 = vld [vmem:[%s1718_s1 + $0x10] sm:$0xff]  }
   0x3   :  { %v1293_v2 = vld [vmem:[%s1718_s1 + $0xc0] sm:$0xff]   ;;  %1133 = vmatpush3.bf16.msra.mxu0 %v1292_v1  ;;  %v1297_v6 = vld [vmem:[%s1718_s1 + $0xc8] sm:$0xff]   ;;  %v1301_v10 = vld [vmem:[%s1718_s1 + $0xd0] sm:$0xff]  }
   0x4   :  { %v1294_v3 = vld [vmem:[%s1718_s1 + $0x80] sm:$0xff]   ;;  %1154 = vmatprep.subr.bf16.mxu1 %v1293_v2  ;;  %1134 = vmatprep.subr.bf16.mxu0 %v1295_v4  ;;  %v1298_v7 = vld [vmem:[%s1718_s1 + $0x88] sm:$0xff]   ;;  %v1302_v11 = vld [vmem:[%s1718_s1 + $0x90] sm:$0xff]  }
   0x5   :  { %1155 = vmatpush3.bf16.msra.mxu1 %v1294_v3  ;;  %v1303_v12 = vld [vmem:[%s1718_s1 + $0x58] sm:$0xff]   ;;  %v1307_v16 = vld [vmem:[%s1718_s1 + $0x60] sm:$0xff]   ;;  %v1311_v20 = vld [vmem:[%s1718_s1 + $0x68] sm:$0xff]  }
   0x6   :  { %1156 = vmatprep.subr.bf16.mxu1 %v1297_v6  ;;  %v1304_v13 = vld [vmem:[%s1718_s1 + $0x18] sm:$0xff]   ;;  %v1308_v17 = vld [vmem:[%s1718_s1 + $0x20] sm:$0xff]   ;;  %v1312_v21 = vld [vmem:[%s1718_s1 + $0x28] sm:$0xff]  }
   0x7   :  { %1135 = vmatpush3.bf16.msra.mxu0 %v1296_v5  ;;  %v1305_v14 = vld [vmem:[%s1718_s1 + $0xd8] sm:$0xff]   ;;  %v1309_v18 = vld [vmem:[%s1718_s1 + $0xe0] sm:$0xff]   ;;  %v1313_v22 = vld [vmem:[%s1718_s1 + $0xe8] sm:$0xff]  }
   0x8   :  { %1136 = vmatprep.subr.bf16.mxu0 %v1299_v8  ;;  %v1306_v15 = vld [vmem:[%s1718_s1 + $0x98] sm:$0xff]   ;;  %v1310_v19 = vld [vmem:[%s1718_s1 + $0xa0] sm:$0xff]   ;;  %v1314_v23 = vld [vmem:[%s1718_s1 + $0xa8] sm:$0xff]  }
   0x9   :  { %1157 = vmatpush3.bf16.msra.mxu1 %v1298_v7  ;;  %v1315_v24 = vld [vmem:[%s1718_s1 + $0x70] sm:$0xff]   ;;  %v1319_v28 = vld [vmem:[%s1718_s1 + $0x78] sm:$0xff]   ;;  %v27_v32 = vld [vmem:[%s1719_s0] sm:$0xff] }
   0xa   :  { %1158 = vmatprep.subr.bf16.mxu1 %v1301_v10  ;;  %v1316_v25 = vld [vmem:[%s1718_s1 + $0x30] sm:$0xff]   ;;  %v1320_v29 = vld [vmem:[%s1718_s1 + $0x38] sm:$0xff]   ;;  %v1038_v33 = vcombine.low %v27_v32, %v27_v32  ;;  %v1039_v34 = vcombine.high %v27_v32, %v27_v32  ;;  %v1325_v35 = vld [vmem:[%s1718_s1 + $0x140] sm:$0xff]  }
   0xb   :  { %1137 = vmatpush3.bf16.msra.mxu0 %v1300_v9  ;;  %v1317_v26 = vld [vmem:[%s1718_s1 + $0xf0] sm:$0xff]   ;;  %v1321_v30 = vld [vmem:[%s1718_s1 + $0xf8] sm:$0xff]   ;;  %v28_v36 = vld [vmem:[%s1719_s0 + $0x8] sm:$0xff] }
   0xc   :  { %1138 = vmatprep.subr.bf16.mxu0 %v1303_v12  ;;  %v1318_v27 = vld [vmem:[%s1718_s1 + $0xb0] sm:$0xff]   ;;  %v1322_v31 = vld [vmem:[%s1718_s1 + $0xb8] sm:$0xff]   ;;  %v1040_v37 = vcombine.low %v28_v36, %v28_v36  ;;  %v1041_v38 = vcombine.high %v28_v36, %v28_v36  ;;  %v1328_v39 = vld [vmem:[%s1718_s1 + $0x100] sm:$0xff]   ;;  %634 = vmatprep.mubr.bf16.mxu0 %v1039_v34  ;;  %v1382_v12 = vmov 0.0  }
   0xd   :  { %1159 = vmatpush3.bf16.msra.mxu1 %v1302_v11  ;;  %v1329_v40 = vld [vmem:[%s1718_s1 + $0x1c0] sm:$0xff]   ;;  %v1331_v42 = vld [vmem:[%s1718_s1 + $0x148] sm:$0xff]   ;;  %v1335_v46 = vld [vmem:[%s1718_s1 + $0x150] sm:$0xff]  }
   0xe   :  { %1160 = vmatprep.subr.bf16.mxu1 %v1305_v14  ;;  %674 = vmatprep.mubr.bf16.mxu1 %v1041_v38  ;;  %v1330_v41 = vld [vmem:[%s1718_s1 + $0x180] sm:$0xff]   ;;  %v1332_v43 = vld [vmem:[%s1718_s1 + $0x108] sm:$0xff]   ;;  %v1336_v47 = vld [vmem:[%s1718_s1 + $0x110] sm:$0xff]  }
   0xf   :  { %1139 = vmatpush3.bf16.msra.mxu0 %v1304_v13  ;;  %v1333_v44 = vld [vmem:[%s1718_s1 + $0x1c8] sm:$0xff]   ;;  %v1337_v48 = vld [vmem:[%s1718_s1 + $0x1d0] sm:$0xff]   ;;  %v1339_v50 = vld [vmem:[%s1718_s1 + $0x158] sm:$0xff]  }
  0x10   :  { %1140 = vmatprep.subr.bf16.mxu0 %v1307_v16  ;;  %v1334_v45 = vld [vmem:[%s1718_s1 + $0x188] sm:$0xff]   ;;  %v1338_v49 = vld [vmem:[%s1718_s1 + $0x190] sm:$0xff]   ;;  %v1340_v51 = vld [vmem:[%s1718_s1 + $0x118] sm:$0xff]  }
  0x11   :  { %1161 = vmatpush3.bf16.msra.mxu1 %v1306_v15  ;;  %v1341_v52 = vld [vmem:[%s1718_s1 + $0x1d8] sm:$0xff]   ;;  %v1343_v54 = vld [vmem:[%s1718_s1 + $0x160] sm:$0xff]   ;;  %v1347_v58 = vld [vmem:[%s1718_s1 + $0x168] sm:$0xff]  }
  0x12   :  { %1162 = vmatprep.subr.bf16.mxu1 %v1309_v18  ;;  %v1342_v53 = vld [vmem:[%s1718_s1 + $0x198] sm:$0xff]   ;;  %v1344_v55 = vld [vmem:[%s1718_s1 + $0x120] sm:$0xff]   ;;  %v1348_v59 = vld [vmem:[%s1718_s1 + $0x128] sm:$0xff]  }
  0x13   :  { %1141 = vmatpush3.bf16.msra.mxu0 %v1308_v17  ;;  %v1345_v56 = vld [vmem:[%s1718_s1 + $0x1e0] sm:$0xff]   ;;  %v1349_v60 = vld [vmem:[%s1718_s1 + $0x1e8] sm:$0xff]   ;;  %v1351_v62 = vld [vmem:[%s1718_s1 + $0x170] sm:$0xff]  }
  0x14   :  { %1142 = vmatprep.subr.bf16.mxu0 %v1311_v20  ;;  %v1346_v57 = vld [vmem:[%s1718_s1 + $0x1a0] sm:$0xff]   ;;  %v1350_v61 = vld [vmem:[%s1718_s1 + $0x1a8] sm:$0xff]   ;;  %v1352_v63 = vld [vmem:[%s1718_s1 + $0x130] sm:$0xff]  }
  0x15   :  { %1163 = vmatpush3.bf16.msra.mxu1 %v1310_v19  ;;  %v1353_v0 = vld [vmem:[%s1718_s1 + $0x1f0] sm:$0xff]   ;;  %v1355_v2 = vld [vmem:[%s1718_s1 + $0x178] sm:$0xff]   ;;  %v1363_v13 = vld [vmem:[%s1718_s1 + $0x200] sm:$0xff]  }
  0x16   :  { %1164 = vmatprep.subr.bf16.mxu1 %v1313_v22  ;;  %v1354_v1 = vld [vmem:[%s1718_s1 + $0x1b0] sm:$0xff]   ;;  %v1356_v3 = vld [vmem:[%s1718_s1 + $0x138] sm:$0xff]   ;;  %v1364_v14 = vld [vmem:[%s1718_s1 + $0x208] ss:$0 sps:$4 sm:$0x33]  }
  0x17   :  { %1143 = vmatpush3.bf16.msra.mxu0 %v1312_v21  ;;  %v1357_v4 = vld [vmem:[%s1718_s1 + $0x1f8] sm:$0xff]   ;;  %v29_v6 = vld [vmem:[%s1719_s0 + $0x10] sm:$0xff]  ;;  %v600_v15 = vsel %vm598_vm0, %v1364_v14, 0  ;;  %v1365_v16 = vld [vmem:[%s1719_s0 + $0x20] ss:$0 sps:$4 sm:$0xff]  }
  0x18   :  { %1144 = vmatprep.subr.bf16.mxu0 %v1315_v24  ;;  %v1358_v5 = vld [vmem:[%s1718_s1 + $0x1b8] sm:$0xff]   ;;  %v1042_v7 = vcombine.low %v29_v6, %v29_v6  ;;  %v1043_v8 = vcombine.high %v29_v6, %v29_v6  ;;  %v1366_v17 = vld [vmem:[%s1720_s3] sm:$0xff]   ;;  %v1367_v18 = vld [vmem:[%s1720_s3 + $0x8] sm:$0xff]  }
  0x19   :  { %1165 = vmatpush3.bf16.msra.mxu1 %v1314_v23  ;;  %v30_v9 = vld [vmem:[%s1719_s0 + $0x18] sm:$0xff]  ;;  %v1368_v19 = vld [vmem:[%s1720_s3 + $0x10] sm:$0xff]   ;;  %v1370_v21 = vld [vmem:[%s1720_s3 + $0x20] sm:$0xff]  }
  0x1a   :  { %1166 = vmatprep.subr.bf16.mxu1 %v1317_v26  ;;  %v1044_v10 = vcombine.low %v30_v9, %v30_v9  ;;  %v1045_v11 = vcombine.high %v30_v9, %v30_v9  ;;  %v1369_v20 = vld [vmem:[%s1720_s3 + $0x18] sm:$0xff]   ;;  %v1371_v22 = vld [vmem:[%s1720_s3 + $0x28] sm:$0xff]   ;;  %v1372_v23 = vld [vmem:[%s1720_s3 + $0x30] sm:$0xff]  }
  0x1b   :  { %1145 = vmatpush3.bf16.msra.mxu0 %v1316_v25  ;;  %v1373_v24 = vld [vmem:[%s1720_s3 + $0x38] sm:$0xff]   ;;  %v1374_v25 = vld [vmem:[%s1721_s5] sm:$0xff]   ;;  %v1375_v26 = vld [vmem:[%s1721_s5 + $0x8] sm:$0xff]  }
  0x1c   :  { %1146 = vmatprep.subr.bf16.mxu0 %v1319_v28  ;;  %v1377_v28 = vld [vmem:[%s1721_s5 + $0x18] sm:$0xff]   ;;  %v1037_v32 = vld [vmem:[%s1722_s2] ss:$0 sm:$0xff] }
  0x1d   :  { %1167 = vmatpush3.bf16.msra.mxu1 %v1318_v27  ;;  %v1376_v27 = vld [vmem:[%s1721_s5 + $0x10] sm:$0xff]  }
  0x1e   :  { %1168 = vmatprep.subr.bf16.mxu1 %v1321_v30  ;;  %v1379_v30 = vld [vmem:[%s1721_s5 + $0x28] sm:$0xff]  }
  0x1f   :  { %1147 = vmatpush3.bf16.msra.mxu0 %v1320_v29  ;;  %v1378_v29 = vld [vmem:[%s1721_s5 + $0x20] sm:$0xff]  }
  0x20   :  { %1176 = vmatprep.subr.bf16.mxu0 %v1325_v35 }
  0x21   :  { %1169 = vmatpush3.bf16.msra.mxu1 %v1322_v31 }
  0x22   :  { %635 = vmatmul.mubr.bf16.vlgmr.msra.gmra.mrb[0].mxu0 %v1038_v33  ;;  %1198 = vmatprep.subr.bf16.mxu1 %v1329_v40 }
  0x23   :  { %1177 = vmatpush3.bf16.msra.mxu0 %v1328_v39  ;;  %714 = vmatprep.mubr.bf16.mxu0 %v1043_v8 }
  0x24   :  { %675 = vmatmul.mubr.bf16.vlgmr.msra.gmra.mrb[0].mxu1 %v1040_v37  ;;  %1178 = vmatprep.subr.bf16.mxu0 %v1331_v42 }
  0x25   :  { %1199 = vmatpush3.bf16.msra.mxu1 %v1330_v41  ;;  %754 = vmatprep.mubr.bf16.mxu1 %v1045_v11  ;;  %v1123_v11 = vld [vmem:[%s1724_s6] ss:$0 sm:$0xff] }
  0x26   :  { %1200 = vmatprep.subr.bf16.mxu1 %v1333_v44 }
  0x27   :  { %1179 = vmatpush3.bf16.msra.mxu0 %v1332_v43 }
  0x28   :  { %1180 = vmatprep.subr.bf16.mxu0 %v1335_v46 }
  0x29   :  { %1201 = vmatpush3.bf16.msra.mxu1 %v1334_v45 }
  0x2a   :  { %1202 = vmatprep.subr.bf16.mxu1 %v1337_v48 }
  0x2b   :  { %1181 = vmatpush3.bf16.msra.mxu0 %v1336_v47 }
  0x2c   :  { %1182 = vmatprep.subr.bf16.mxu0 %v1339_v50 }
  0x2d   :  { %1203 = vmatpush3.bf16.msra.mxu1 %v1338_v49 }
  0x2e   :  { %1204 = vmatprep.subr.bf16.mxu1 %v1341_v52 }
  0x2f   :  { %1183 = vmatpush3.bf16.msra.mxu0 %v1340_v51 }
  0x30   :  { %1184 = vmatprep.subr.bf16.mxu0 %v1343_v54 }
  0x31   :  { %1205 = vmatpush3.bf16.msra.mxu1 %v1342_v53 }
  0x32   :  { %1206 = vmatprep.subr.bf16.mxu1 %v1345_v56 }
  0x33   :  { %1185 = vmatpush3.bf16.msra.mxu0 %v1344_v55 }
  0x34   :  { %1186 = vmatprep.subr.bf16.mxu0 %v1347_v58 }
  0x35   :  { %1207 = vmatpush3.bf16.msra.mxu1 %v1346_v57 }
  0x36   :  { %1208 = vmatprep.subr.bf16.mxu1 %v1349_v60 }
  0x37   :  { %1187 = vmatpush3.bf16.msra.mxu0 %v1348_v59 }
  0x38   :  { %1188 = vmatprep.subr.bf16.mxu0 %v1351_v62 }
  0x39   :  { %1209 = vmatpush3.bf16.msra.mxu1 %v1350_v61 }
  0x3a   :  { %1210 = vmatprep.subr.bf16.mxu1 %v1353_v0  ;;  %v1380_v0 = vld [vmem:[%s1721_s5 + $0x30] sm:$0xff]  }
  0x3b   :  { %1189 = vmatpush3.bf16.msra.mxu0 %v1352_v63 }
  0x3c   :  { %1190 = vmatprep.subr.bf16.mxu0 %v1355_v2  ;;  %v1114_v2 = vld [vmem:[%s1723_s4] ss:$0 sm:$0xff] }
  0x3d   :  { %1211 = vmatpush3.bf16.msra.mxu1 %v1354_v1  ;;  %v1381_v1 = vld [vmem:[%s1721_s5 + $0x38] sm:$0xff]  }
  0x3e   :  { %1212 = vmatprep.subr.bf16.mxu1 %v1357_v4 }
  0x3f   :  { %1191 = vmatpush3.bf16.msra.mxu0 %v1356_v3 }
  0x40   :  { %1241 = vmatprep.subr.bf16.mxu0 %v1382_v12 }
  0x41   :  { %1213 = vmatpush3.bf16.msra.mxu1 %v1358_v5 }
  0x42   :  { %715 = vmatmul.mubr.bf16.vlgmr.msra.gmra.mrb[4].mxu0 %v1042_v7  ;;  %1249 = vmatprep.subr.bf16.mxu1 %v1382_v12 }
  0x43   :  { %1242 = vmatpush3.bf16.msra.mxu0 %v1363_v13  ;;  %1245 = vmatprep.mubr.msk.bf16.mxu0 %vm1383_vm1, %v1382_v12 }
  0x44   :  { %755 = vmatmul.mubr.bf16.vlgmr.msra.gmra.mrb[4].mxu1 %v1044_v10  ;;  %1243 = vmatprep.subr.bf16.mxu0 %v1382_v12 }
  0x45   :  { %1265 = vmatprep.mubr.msk.bf16.mxu1 %vm1383_vm1, %v1382_v12  ;;  %1250 = vmatpush3.bf16.msra.mxu1 %v1366_v17 }
  0x46   :  { %1251 = vmatprep.subr.bf16.mxu1 %v1382_v12 }
  0x47   :  { %1244 = vmatpush3.bf16.msra.mxu0 %v600_v15 }
  0x48   :  { %1269 = vmatprep.subr.bf16.mxu0 %v1382_v12 }
  0x49   :  { %1252 = vmatpush3.bf16.msra.mxu1 %v1367_v18 }
  0x4a   :  { %1246 = vmatmul.mubr.msk.bf16.vlgmr.msra.gmra.mrb[8].mxu0 %vm594_vm2, %v1365_v16  ;;  %1253 = vmatprep.subr.bf16.mxu1 %v1382_v12 }
  0x4b   :  { %1285 = vmatprep.mubr.msk.bf16.mxu0 %vm1383_vm1, %v1382_v12  ;;  %1270 = vmatpush3.bf16.msra.mxu0 %v1374_v25 }
  0x4c   :  { %1271 = vmatprep.subr.bf16.mxu0 %v1382_v12 }
  0x4d   :  { %1254 = vmatpush3.bf16.msra.mxu1 %v1368_v19 }
  0x4e   :  { %1255 = vmatprep.subr.bf16.mxu1 %v1382_v12 }
  0x4f   :  { %1272 = vmatpush3.bf16.msra.mxu0 %v1375_v26 }
  0x50   :  { %1273 = vmatprep.subr.bf16.mxu0 %v1382_v12 }
  0x51   :  { %1256 = vmatpush3.bf16.msra.mxu1 %v1369_v20 }
  0x52   :  { %1257 = vmatprep.subr.bf16.mxu1 %v1382_v12 }
  0x53   :  { %1274 = vmatpush3.bf16.msra.mxu0 %v1376_v27 }
  0x54   :  { %1275 = vmatprep.subr.bf16.mxu0 %v1382_v12 }
  0x55   :  { %1258 = vmatpush3.bf16.msra.mxu1 %v1370_v21 }
  0x56   :  { %1259 = vmatprep.subr.bf16.mxu1 %v1382_v12 }
  0x57   :  { %1276 = vmatpush3.bf16.msra.mxu0 %v1377_v28 }
  0x58   :  { %1277 = vmatprep.subr.bf16.mxu0 %v1382_v12 }
  0x59   :  { %1260 = vmatpush3.bf16.msra.mxu1 %v1371_v22 }
  0x5a   :  { %1261 = vmatprep.subr.bf16.mxu1 %v1382_v12 }
  0x5b   :  { %1278 = vmatpush3.bf16.msra.mxu0 %v1378_v29 }
  0x5c   :  { %1279 = vmatprep.subr.bf16.mxu0 %v1382_v12 }
  0x5d   :  { %1262 = vmatpush3.bf16.msra.mxu1 %v1372_v23 }
  0x5e   :  { %1263 = vmatprep.subr.bf16.mxu1 %v1382_v12 }
  0x5f   :  { %1280 = vmatpush3.bf16.msra.mxu0 %v1379_v30 }
  0x60   :  { %1281 = vmatprep.subr.bf16.mxu0 %v1382_v12 }
  0x61   :  { %1264 = vmatpush3.bf16.msra.mxu1 %v1373_v24 }
  0x63   :  { %1282 = vmatpush3.bf16.msra.mxu0 %v1380_v0 }
  0x64   :  { %1283 = vmatprep.subr.bf16.mxu0 %v1382_v12 }
  0x67   :  { %1284 = vmatpush3.bf16.msra.mxu0 %v1381_v1 }
  0xf5   :  { %v1148_v31 = vpop.f32.mrb[0].mxu0 }
  0xf6   :  { %v1149_v33 = vpop.f32.mrb[1].mxu0 }
  0xf7   :  { %v1150_v34 = vadd.f32 %v1149_v33, %v1148_v31  ;;  %v1151_v35 = vpop.f32.mrb[2].mxu0  ;;  %v1170_v36 = vpop.f32.mrb[0].mxu1 }
  0xf8   :  { %v1152_v37 = vpop.f32.mrb[3].mxu0  ;;  %v1171_v38 = vpop.f32.mrb[1].mxu1 }
  0xf9   :  { %v637_v39 = vadd.f32 %v1150_v34, %v1037_v32  ;;  %v1172_v40 = vadd.f32 %v1171_v38, %v1170_v36  ;;  %v1173_v41 = vpop.f32.mrb[2].mxu1 }
  0xfa   :  { %v1174_v42 = vpop.f32.mrb[3].mxu1 }
  0xfb   :  { %v677_v43 = vadd.f32 %v1172_v40, %v637_v39 }
 0x115   :  { %v1192_v44 = vpop.f32.mrb[4].mxu0 }
 0x116   :  { %v1193_v45 = vpop.f32.mrb[5].mxu0 }
 0x117   :  { %v1194_v46 = vadd.f32 %v1193_v45, %v1192_v44  ;;  %v1214_v47 = vpop.f32.mrb[4].mxu1  ;;  %v1195_v48 = vpop.f32.mrb[6].mxu0 }
 0x118   :  { %v1215_v49 = vpop.f32.mrb[5].mxu1  ;;  %v1196_v50 = vpop.f32.mrb[7].mxu0 }
 0x119   :  { %v717_v51 = vadd.f32 %v1194_v46, %v677_v43  ;;  %v1216_v52 = vadd.f32 %v1215_v49, %v1214_v47  ;;  %v1217_v53 = vpop.f32.mrb[6].mxu1 }
 0x11a   :  { %v1218_v54 = vpop.f32.mrb[7].mxu1 }
 0x11b   :  { %v757_v55 = vadd.f32 %v1216_v52, %v717_v51 }
 0x11d   :  { %v796_v56 = vpop.f32.mrb[8].mxu0 }
 0x11e   :  { %v797_v57 = vadd.f32 %v796_v56, %v757_v55  ;;  %v1247_v58 = vpop.f32.mrb[9].mxu0 }
 0x11f   :  { %v799_v59 = vpop.f32.mrb[10].mxu0 }
 0x120   :  { %vm802_vm3 = vcmp.ge.f32.partialorder %v797_v57, 0.0  ;;  %v803_v60 = vmul.f32 0.2, %v797_v57  ;;  %v1248_v61 = vpop.f32.mrb[11].mxu0 }
 0x122   :  { %v804_v62 = vsel %vm802_vm3, %v797_v57, %v803_v60 }
 0x123   :  { %v805_v63 = vpack.c.bf16 %v804_v62, %v804_v62 }
 0x125   :  { %1266 = vmatmul.mubr.bf16.vlgmr.msra.gmra.mrb[8].mxu1 %v805_v63 }
 0x1f8   :  { %v911_v3 = vpop.f32.mrb[8].mxu1 }
 0x1f9   :  { %v912_v4 = vadd.f32 %v1114_v2, %v911_v3  ;;  %v1267_v5 = vpop.f32.mrb[9].mxu1 }
 0x1fa   :  { %v914_v6 = vpop.f32.mrb[10].mxu1 }
 0x1fb   :  { %vm917_vm4 = vcmp.ge.f32.partialorder %v912_v4, 0.0  ;;  %v918_v7 = vmul.f32 0.2, %v912_v4  ;;  %v1268_v8 = vpop.f32.mrb[11].mxu1 }
 0x1fd   :  { %v919_v9 = vsel %vm917_vm4, %v912_v4, %v918_v7 }
 0x1fe   :  { %v920_v10 = vpack.c.bf16 %v919_v9, %v919_v9 }
 0x200   :  { %1286 = vmatmul.mubr.bf16.vlgmr.msra.gmra.mrb[12].mxu0 %v920_v10 }
 0x2d3   :  { %v1026_v12 = vpop.f32.mrb[12].mxu0 }
 0x2d4   :  { %v1027_v13 = vadd.f32 %v1123_v11, %v1026_v12  ;;  %v1287_v14 = vpop.f32.mrb[13].mxu0 }
 0x2d5   :  { %v1029_v15 = vpop.f32.mrb[14].mxu0 }
 0x2d6   :  { %1032 = vst [vmem:[%s1725_s7] sm:$0xff] %v1027_v13  ;;  %v1288_v16 = vpop.f32.mrb[15].mxu0 }

</bundles_post_ra>
